<compile_context>
chip_gen: v7x
topology: tpu7x:2x2x1
jax: 0.10.0
libtpu: 0.0.40
codegen_flags: <defaults>
</compile_context>

<pallas_src>
import jax
import jax.numpy as jnp
from jax.experimental import pallas as pl
from jax.experimental.pallas import tpu as pltpu


# ----------------------------- Pallas kernel ---------------------------------

def _bilstm_fc_kernel(x_ref, wih0_ref, whh0_ref, b0_ref,
                      wih1_ref, whh1_ref, b1_ref,
                      fcw_ref, fcb_ref,
                      out_ref,
                      gx_sc, midf_sc, midb_sc):
    """Fused: 2-layer bidirectional LSTM + final Linear, single invocation.

    x_ref:   [T, B, E]          time-major input (already embedded)
    wih{l}:  [D_in, 8H]         stacked [fwd | bwd] input->gates weights
    whh{l}:  [H, 8H]            stacked [fwd | bwd] hidden->gates weights
    b{l}:    [1, 8H]            stacked (b_ih + b_hh)
    fcw:     [2H, C], fcb: [1, C]
    out_ref: [B, C]             logits
    gx_sc:   [T, B, 8H]         precomputed input gates (reused by both layers)
    midf_sc/midb_sc: [T, B, H]  layer-0 fwd / bwd outputs (layer-1 input halves)
    """
    T, B, _ = x_ref.shape
    H = whh0_ref.shape[0]
    G = 4 * H

    def run_layer(whh_ref, write_outputs):
        whh = whh_ref[...]                                        # [H, 8H], loaded once

        def step(t, carry):
            h, c = carry                                          # [2B, H] each (fwd|bwd rows)
            ga = gx_sc[t]                                         # [B, 8H]; fwd gates in cols :G
            gb = gx_sc[T - 1 - t]                                 # [B, 8H]; bwd gates in cols G:
            hh = jnp.dot(h, whh, preferred_element_type=jnp.float32)   # [2B, 8H]
            gates = jnp.concatenate(
                [ga[:, :G] + hh[:B, :G],                          # fwd rows
                 gb[:, G:] + hh[B:, G:]],                         # bwd rows
                axis=0)                                           # [2B, 4H] == one f32 vreg
            i = jax.nn.sigmoid(gates[:, 0 * H:1 * H])
            f = jax.nn.sigmoid(gates[:, 1 * H:2 * H])
            g = jnp.tanh(gates[:, 2 * H:3 * H])
            o = jax.nn.sigmoid(gates[:, 3 * H:4 * H])
            c = f * c + i * g
            h = o * jnp.tanh(c)
            if write_outputs:
                midf_sc[t] = h[:B]                                # fwd output at time t
                midb_sc[T - 1 - t] = h[B:]                        # bwd output at time T-1-t
            return h, c

        h0 = jnp.zeros((2 * B, H), jnp.float32)
        c0 = jnp.zeros((2 * B, H), jnp.float32)
        h_fin, _ = jax.lax.fori_loop(0, T, step, (h0, c0), unroll=True)
        return h_fin                                              # [2B, H] final hidden states

    # ---- layer 0: hoisted input projection (one MXU matmul over all T*B rows, N=8H).
    x2 = x_ref[...].reshape(T * B, x_ref.shape[2])
    gx0 = jnp.dot(x2, wih0_ref[...], preferred_element_type=jnp.float32) + b0_ref[...]
    gx_sc[...] = gx0.reshape(T, B, 8 * H)
    run_layer(whh0_ref, write_outputs=True)

    # ---- layer 1: input projection from the two direction halves (K-split avoids a concat).
    mf = midf_sc[...].reshape(T * B, H)
    mb = midb_sc[...].reshape(T * B, H)
    gx1 = (jnp.dot(mf, wih1_ref[:H, :], preferred_element_type=jnp.float32)
           + jnp.dot(mb, wih1_ref[H:, :], preferred_element_type=jnp.float32)
           + b1_ref[...])
    gx_sc[...] = gx1.reshape(T, B, 8 * H)
    h_fin = run_layer(whh1_ref, write_outputs=False)              # only final hiddens needed

    # ---- fused FC on cat(h_fwd_final, h_bwd_final); fc_w split along K instead of concat.
    logits = (jnp.dot(h_fin[:B], fcw_ref[:H, :], preferred_element_type=jnp.float32)
              + jnp.dot(h_fin[B:], fcw_ref[H:, :], preferred_element_type=jnp.float32)
              + fcb_ref[...])
    out_ref[...] = logits.astype(out_ref.dtype)
    # TODO(synk): on v7x the two directions could run on separate TensorCores via pl.core_map;
    #             the portable single-core fused version is kept here.
    # TODO(synk): dropout is identity (eval mode); training-mode dropout masks not implemented.


# ----------------------------- wrapper -----------------------------------------

def lstm_net_forward(text, params):
    """text: [B, T] int32 token ids -> logits [B, num_class]."""
    # torch.t(text) + embedding lookup: gather stays in XLA (glue); output is already time-major.
    x = jnp.take(params["embedding"], text.T, axis=0).astype(jnp.float32)   # [T, B, E]
    T, B, _ = x.shape
    l0, l1 = params["lstm"]
    H = l0["w_hh"].shape[0]
    C = params["fc_w"].shape[1]
    return pl.pallas_call(
        _bilstm_fc_kernel,
        out_shape=jax.ShapeDtypeStruct((B, C), jnp.float32),
        scratch_shapes=[
            pltpu.VMEM((T, B, 8 * H), jnp.float32),   # precomputed input gates (both layers)
            pltpu.VMEM((T, B, H), jnp.float32),       # layer-0 fwd outputs
            pltpu.VMEM((T, B, H), jnp.float32),       # layer-0 bwd outputs
        ],
    )(x, l0["w_ih"], l0["w_hh"], l0["b"],
      l1["w_ih"], l1["w_hh"], l1["b"],
      params["fc_w"], params["fc_b"].reshape(1, -1))


# ----------------------------- pure-JAX reference -------------------------------

def _ref_lstm_dir(x, w_ih, w_hh, b):
    T, B, _ = x.shape
    H = w_hh.shape[0]

    def step(carry, x_t):
        h, c = carry
        gates = x_t @ w_ih + h @ w_hh + b
        i = jax.nn.sigmoid(gates[:, :H])
        f = jax.nn.sigmoid(gates[:, H:2 * H])
        g = jnp.tanh(gates[:, 2 * H:3 * H])
        o = jax.nn.sigmoid(gates[:, 3 * H:4 * H])
        c = f * c + i * g
        h = o * jnp.tanh(c)
        return (h, c), h

    (h, c), out = jax.lax.scan(step, (jnp.zeros((B, H)), jnp.zeros((B, H))), x)
    return out, h, c


def ref_forward(text, params):
    x = jnp.take(params["embedding"], text.T, axis=0).astype(jnp.float32)   # [T, B, E]
    layer_in = x
    h_f = h_b = None
    for lp in params["lstm"]:
        H = lp["w_hh"].shape[0]
        G = 4 * H
        out_f, h_f, _ = _ref_lstm_dir(layer_in, lp["w_ih"][:, :G], lp["w_hh"][:, :G], lp["b"][:, :G])
        out_b_r, h_b, _ = _ref_lstm_dir(layer_in[::-1], lp["w_ih"][:, G:], lp["w_hh"][:, G:], lp["b"][:, G:])
        layer_in = jnp.concatenate([out_f, out_b_r[::-1]], axis=-1)
    hidden = jnp.concatenate([h_f, h_b], axis=-1)
    return hidden @ params["fc_w"] + params["fc_b"][None, :]


# ----------------------------- param init ---------------------------------------

def init_params(key, *, n_words, embed_size, hidden_dim, n_layers, num_class, pad_idx):
    keys = iter(jax.random.split(key, 64))
    scale = 1.0 / (hidden_dim ** 0.5)
    H = hidden_dim
    params = {}
    emb = 0.1 * jax.random.normal(next(keys), (n_words, embed_size), jnp.float32)
    emb = emb.at[pad_idx].set(0.0)   # padding_idx row (W_emb offset omitted for synthetic init)
    params["embedding"] = emb
    params["lstm"] = []
    for l in range(n_layers):
        d_in = embed_size if l == 0 else 2 * H
        w_ih, w_hh, b = [], [], []
        for _ in ("fwd", "bwd"):
            w_ih.append(jax.random.uniform(next(keys), (d_in, 4 * H), jnp.float32, -scale, scale))
            w_hh.append(jax.random.uniform(next(keys), (H, 4 * H), jnp.float32, -scale, scale))
            b_ih = jax.random.uniform(next(keys), (4 * H,), jnp.float32, -scale, scale)
            b_hh = jax.random.uniform(next(keys), (4 * H,), jnp.float32, -scale, scale)
            b.append(b_ih + b_hh)
        params["lstm"].append({
            "w_ih": jnp.concatenate(w_ih, axis=1),            # [D_in, 8H] = [fwd | bwd]
            "w_hh": jnp.concatenate(w_hh, axis=1),            # [H, 8H]
            "b": jnp.concatenate(b, axis=0).reshape(1, -1),   # [1, 8H]
        })
    params["fc_w"] = jax.random.uniform(next(keys), (2 * H, num_class), jnp.float32, -scale, scale)
    params["fc_b"] = jax.random.uniform(next(keys), (num_class,), jnp.float32, -scale, scale)
    return params


# ----------------------------- main ----------------------------------------------

if __name__ == "__main__":
    # Small shapes consistent with the module (opt.maxlen -> T, opt.embed_size -> E,
    # opt.hidden_dim -> H, opt.n_layers=2, bidirectional=True, opt.num_class=2, ngram//2 -> pad_idx).
    B, T, E, H, N_WORDS, N_CLASS, N_LAYERS, PAD_IDX = 4, 8, 32, 32, 50, 2, 2, 15

    key = jax.random.PRNGKey(0)
    k_param, k_text = jax.random.split(key)
    params = init_params(k_param, n_words=N_WORDS, embed_size=E, hidden_dim=H,
                         n_layers=N_LAYERS, num_class=N_CLASS, pad_idx=PAD_IDX)
    text = jax.random.randint(k_text, (B, T), 0, N_WORDS, dtype=jnp.int32)

    logits = jax.block_until_ready(lstm_net_forward(text, params))
    ref = jax.block_until_ready(ref_forward(text, params))

    assert logits.shape == (B, N_CLASS)
    assert jnp.allclose(logits, ref, atol=2e-2, rtol=2e-2), (logits, ref)

    print("KERNEL_OK")
</pallas_src>

<mosaic_0001>
module attributes {stable_mosaic.version = 11 : i64} {
  func.func @_bilstm_fc_kernel(%arg0: memref<8x4x32xf32, #tpu.memory_space<vmem>>, %arg1: memref<32x256xf32, #tpu.memory_space<vmem>>, %arg2: memref<32x256xf32, #tpu.memory_space<vmem>>, %arg3: memref<1x256xf32, #tpu.memory_space<vmem>>, %arg4: memref<64x256xf32, #tpu.memory_space<vmem>>, %arg5: memref<32x256xf32, #tpu.memory_space<vmem>>, %arg6: memref<1x256xf32, #tpu.memory_space<vmem>>, %arg7: memref<64x2xf32, #tpu.memory_space<vmem>>, %arg8: memref<1x2xf32, #tpu.memory_space<vmem>>, %arg9: memref<4x2xf32, #tpu.memory_space<vmem>>, %arg10: memref<8x4x256xf32, #tpu.memory_space<vmem>>, %arg11: memref<8x4x32xf32, #tpu.memory_space<vmem>>, %arg12: memref<8x4x32xf32, #tpu.memory_space<vmem>>) attributes {dimension_semantics = [], scalar_prefetch = 0 : i64, scratch_operands = 3 : i64, tpu.core_type = #tpu.core_type<tc>} {
    %c0 = arith.constant 0 : index
    %c0_0 = arith.constant 0 : index
    %c0_1 = arith.constant 0 : index
    %0 = vector.load %arg0[%c0, %c0_0, %c0_1] : memref<8x4x32xf32, #tpu.memory_space<vmem>>, vector<8x4x32xf32>
    %1 = vector.shape_cast %0 : vector<8x4x32xf32> to vector<32x32xf32>
    %c0_2 = arith.constant 0 : index
    %c0_3 = arith.constant 0 : index
    %2 = vector.load %arg1[%c0_2, %c0_3] : memref<32x256xf32, #tpu.memory_space<vmem>>, vector<32x256xf32>
    %cst = arith.constant dense<0.000000e+00> : vector<32x256xf32>
    %3 = tpu.matmul %1, %2, %cst {dimension_numbers = #tpu.dot_dimension_numbers<[1], [0], [0], [1], [0, 0, 1, 1], [], []>} : vector<32x32xf32>, vector<32x256xf32>, vector<32x256xf32> -> vector<32x256xf32>
    %c0_4 = arith.constant 0 : index
    %c0_5 = arith.constant 0 : index
    %4 = vector.load %arg3[%c0_4, %c0_5] : memref<1x256xf32, #tpu.memory_space<vmem>>, vector<1x256xf32>
    %5 = vector.broadcast %4 : vector<1x256xf32> to vector<32x256xf32>
    %6 = arith.addf %3, %5 : vector<32x256xf32>
    %7 = vector.shape_cast %6 : vector<32x256xf32> to vector<8x4x256xf32>
    %c0_6 = arith.constant 0 : index
    %c0_7 = arith.constant 0 : index
    %c0_8 = arith.constant 0 : index
    %8 = vector.load %arg10[%c0_6, %c0_7, %c0_8] : memref<8x4x256xf32, #tpu.memory_space<vmem>>, vector<8x4x256xf32>
    tpu.vector_store %arg10[%c0_6, %c0_7, %c0_8], %7 {strides = array<i32>} : memref<8x4x256xf32, #tpu.memory_space<vmem>>, vector<8x4x256xf32>,
    %c0_9 = arith.constant 0 : index
    %c0_10 = arith.constant 0 : index
    %9 = vector.load %arg2[%c0_9, %c0_10] : memref<32x256xf32, #tpu.memory_space<vmem>>, vector<32x256xf32>
    %cst_11 = arith.constant 0.000000e+00 : f32
    %10 = vector.broadcast %cst_11 : f32 to vector<8x32xf32>
    %cst_12 = arith.constant 0.000000e+00 : f32
    %11 = vector.broadcast %cst_12 : f32 to vector<8x32xf32>
    %c0_i32 = arith.constant 0 : i32
    %12 = arith.index_cast %c0_i32 : i32 to index
    %c0_13 = arith.constant 0 : index
    %c0_14 = arith.constant 0 : index
    %13 = vector.load %arg10[%12, %c0_13, %c0_14] : memref<8x4x256xf32, #tpu.memory_space<vmem>>, vector<1x4x256xf32>
    %14 = vector.shape_cast %13 : vector<1x4x256xf32> to vector<4x256xf32>
    %c7_i32 = arith.constant 7 : i32
    %15 = arith.subi %c7_i32, %c0_i32 : i32
    %16 = arith.index_cast %15 : i32 to index
    %c0_15 = arith.constant 0 : index
    %c0_16 = arith.constant 0 : index
    %17 = vector.load %arg10[%16, %c0_15, %c0_16] : memref<8x4x256xf32, #tpu.memory_space<vmem>>, vector<1x4x256xf32>
    %18 = vector.shape_cast %17 : vector<1x4x256xf32> to vector<4x256xf32>
    %cst_17 = arith.constant dense<0.000000e+00> : vector<8x256xf32>
    %19 = tpu.matmul %10, %9, %cst_17 {dimension_numbers = #tpu.dot_dimension_numbers<[1], [0], [0], [1], [0, 0, 1, 1], [], []>} : vector<8x32xf32>, vector<32x256xf32>, vector<8x256xf32> -> vector<8x256xf32>
    %20 = vector.extract_strided_slice %14 {offsets = [0, 0], sizes = [4, 128], strides = [1, 1]} : vector<4x256xf32> to vector<4x128xf32>
    %21 = vector.extract_strided_slice %19 {offsets = [0, 0], sizes = [4, 128], strides = [1, 1]} : vector<8x256xf32> to vector<4x128xf32>
    %22 = arith.addf %20, %21 : vector<4x128xf32>
    %23 = vector.extract_strided_slice %18 {offsets = [0, 128], sizes = [4, 128], strides = [1, 1]} : vector<4x256xf32> to vector<4x128xf32>
    %24 = vector.extract_strided_slice %19 {offsets = [4, 128], sizes = [4, 128], strides = [1, 1]} : vector<8x256xf32> to vector<4x128xf32>
    %25 = arith.addf %23, %24 : vector<4x128xf32>
    %26 = tpu.concatenate %22, %25 in 0 : vector<4x128xf32>, vector<4x128xf32> -> vector<8x128xf32>
    %27 = vector.extract_strided_slice %26 {offsets = [0, 0], sizes = [8, 32], strides = [1, 1]} : vector<8x128xf32> to vector<8x32xf32>
    %28 = arith.negf %27 : vector<8x32xf32>
    %29 = math.exp %28 : vector<8x32xf32>
    %cst_18 = arith.constant 1.000000e+00 : f32
    %30 = vector.broadcast %cst_18 : f32 to vector<8x32xf32>
    %31 = arith.addf %30, %29 : vector<8x32xf32>
    %32 = arith.divf %30, %31 : vector<8x32xf32>
    %33 = vector.extract_strided_slice %26 {offsets = [0, 32], sizes = [8, 32], strides = [1, 1]} : vector<8x128xf32> to vector<8x32xf32>
    %34 = arith.negf %33 : vector<8x32xf32>
    %35 = math.exp %34 : vector<8x32xf32>
    %cst_19 = arith.constant 1.000000e+00 : f32
    %36 = vector.broadcast %cst_19 : f32 to vector<8x32xf32>
    %37 = arith.addf %36, %35 : vector<8x32xf32>
    %38 = arith.divf %36, %37 : vector<8x32xf32>
    %39 = vector.extract_strided_slice %26 {offsets = [0, 64], sizes = [8, 32], strides = [1, 1]} : vector<8x128xf32> to vector<8x32xf32>
    %40 = math.tanh %39 : vector<8x32xf32>
    %41 = vector.extract_strided_slice %26 {offsets = [0, 96], sizes = [8, 32], strides = [1, 1]} : vector<8x128xf32> to vector<8x32xf32>
    %42 = arith.negf %41 : vector<8x32xf32>
    %43 = math.exp %42 : vector<8x32xf32>
    %cst_20 = arith.constant 1.000000e+00 : f32
    %44 = vector.broadcast %cst_20 : f32 to vector<8x32xf32>
    %45 = arith.addf %44, %43 : vector<8x32xf32>
    %46 = arith.divf %44, %45 : vector<8x32xf32>
    %47 = arith.mulf %38, %11 : vector<8x32xf32>
    %48 = arith.mulf %32, %40 : vector<8x32xf32>
    %49 = arith.addf %47, %48 : vector<8x32xf32>
    %50 = math.tanh %49 : vector<8x32xf32>
    %51 = arith.mulf %46, %50 : vector<8x32xf32>
    %52 = vector.extract_strided_slice %51 {offsets = [0, 0], sizes = [4, 32], strides = [1, 1]} : vector<8x32xf32> to vector<4x32xf32>
    %53 = arith.index_cast %c0_i32 : i32 to index
    %c0_21 = arith.constant 0 : index
    %c0_22 = arith.constant 0 : index
    %54 = vector.load %arg11[%53, %c0_21, %c0_22] : memref<8x4x32xf32, #tpu.memory_space<vmem>>, vector<1x4x32xf32>
    %55 = vector.shape_cast %54 : vector<1x4x32xf32> to vector<4x32xf32>
    %56 = vector.shape_cast %52 : vector<4x32xf32> to vector<1x4x32xf32>
    tpu.vector_store %arg11[%53, %c0_21, %c0_22], %56 {strides = array<i32>} : memref<8x4x32xf32, #tpu.memory_space<vmem>>, vector<1x4x32xf32>,
    %57 = vector.extract_strided_slice %51 {offsets = [4, 0], sizes = [4, 32], strides = [1, 1]} : vector<8x32xf32> to vector<4x32xf32>
    %c7_i32_23 = arith.constant 7 : i32
    %58 = arith.subi %c7_i32_23, %c0_i32 : i32
    %59 = arith.index_cast %58 : i32 to index
    %c0_24 = arith.constant 0 : index
    %c0_25 = arith.constant 0 : index
    %60 = vector.load %arg12[%59, %c0_24, %c0_25] : memref<8x4x32xf32, #tpu.memory_space<vmem>>, vector<1x4x32xf32>
    %61 = vector.shape_cast %60 : vector<1x4x32xf32> to vector<4x32xf32>
    %62 = vector.shape_cast %57 : vector<4x32xf32> to vector<1x4x32xf32>
    tpu.vector_store %arg12[%59, %c0_24, %c0_25], %62 {strides = array<i32>} : memref<8x4x32xf32, #tpu.memory_space<vmem>>, vector<1x4x32xf32>,
    %c1_i32 = arith.constant 1 : i32
    %63 = arith.index_cast %c1_i32 : i32 to index
    %c0_26 = arith.constant 0 : index
    %c0_27 = arith.constant 0 : index
    %64 = vector.load %arg10[%63, %c0_26, %c0_27] : memref<8x4x256xf32, #tpu.memory_space<vmem>>, vector<1x4x256xf32>
    %65 = vector.shape_cast %64 : vector<1x4x256xf32> to vector<4x256xf32>
    %c7_i32_28 = arith.constant 7 : i32
    %66 = arith.subi %c7_i32_28, %c1_i32 : i32
    %67 = arith.index_cast %66 : i32 to index
    %c0_29 = arith.constant 0 : index
    %c0_30 = arith.constant 0 : index
    %68 = vector.load %arg10[%67, %c0_29, %c0_30] : memref<8x4x256xf32, #tpu.memory_space<vmem>>, vector<1x4x256xf32>
    %69 = vector.shape_cast %68 : vector<1x4x256xf32> to vector<4x256xf32>
    %cst_31 = arith.constant dense<0.000000e+00> : vector<8x256xf32>
    %70 = tpu.matmul %51, %9, %cst_31 {dimension_numbers = #tpu.dot_dimension_numbers<[1], [0], [0], [1], [0, 0, 1, 1], [], []>} : vector<8x32xf32>, vector<32x256xf32>, vector<8x256xf32> -> vector<8x256xf32>
    %71 = vector.extract_strided_slice %65 {offsets = [0, 0], sizes = [4, 128], strides = [1, 1]} : vector<4x256xf32> to vector<4x128xf32>
    %72 = vector.extract_strided_slice %70 {offsets = [0, 0], sizes = [4, 128], strides = [1, 1]} : vector<8x256xf32> to vector<4x128xf32>
    %73 = arith.addf %71, %72 : vector<4x128xf32>
    %74 = vector.extract_strided_slice %69 {offsets = [0, 128], sizes = [4, 128], strides = [1, 1]} : vector<4x256xf32> to vector<4x128xf32>
    %75 = vector.extract_strided_slice %70 {offsets = [4, 128], sizes = [4, 128], strides = [1, 1]} : vector<8x256xf32> to vector<4x128xf32>
    %76 = arith.addf %74, %75 : vector<4x128xf32>
    %77 = tpu.concatenate %73, %76 in 0 : vector<4x128xf32>, vector<4x128xf32> -> vector<8x128xf32>
    %78 = vector.extract_strided_slice %77 {offsets = [0, 0], sizes = [8, 32], strides = [1, 1]} : vector<8x128xf32> to vector<8x32xf32>
    %79 = arith.negf %78 : vector<8x32xf32>
    %80 = math.exp %79 : vector<8x32xf32>
    %cst_32 = arith.constant 1.000000e+00 : f32
    %81 = vector.broadcast %cst_32 : f32 to vector<8x32xf32>
    %82 = arith.addf %81, %80 : vector<8x32xf32>
    %83 = arith.divf %81, %82 : vector<8x32xf32>
    %84 = vector.extract_strided_slice %77 {offsets = [0, 32], sizes = [8, 32], strides = [1, 1]} : vector<8x128xf32> to vector<8x32xf32>
    %85 = arith.negf %84 : vector<8x32xf32>
    %86 = math.exp %85 : vector<8x32xf32>
    %cst_33 = arith.constant 1.000000e+00 : f32
    %87 = vector.broadcast %cst_33 : f32 to vector<8x32xf32>
    %88 = arith.addf %87, %86 : vector<8x32xf32>
    %89 = arith.divf %87, %88 : vector<8x32xf32>
    %90 = vector.extract_strided_slice %77 {offsets = [0, 64], sizes = [8, 32], strides = [1, 1]} : vector<8x128xf32> to vector<8x32xf32>
    %91 = math.tanh %90 : vector<8x32xf32>
    %92 = vector.extract_strided_slice %77 {offsets = [0, 96], sizes = [8, 32], strides = [1, 1]} : vector<8x128xf32> to vector<8x32xf32>
    %93 = arith.negf %92 : vector<8x32xf32>
    %94 = math.exp %93 : vector<8x32xf32>
    %cst_34 = arith.constant 1.000000e+00 : f32
    %95 = vector.broadcast %cst_34 : f32 to vector<8x32xf32>
    %96 = arith.addf %95, %94 : vector<8x32xf32>
    %97 = arith.divf %95, %96 : vector<8x32xf32>
    %98 = arith.mulf %89, %49 : vector<8x32xf32>
    %99 = arith.mulf %83, %91 : vector<8x32xf32>
    %100 = arith.addf %98, %99 : vector<8x32xf32>
    %101 = math.tanh %100 : vector<8x32xf32>
    %102 = arith.mulf %97, %101 : vector<8x32xf32>
    %103 = vector.extract_strided_slice %102 {offsets = [0, 0], sizes = [4, 32], strides = [1, 1]} : vector<8x32xf32> to vector<4x32xf32>
    %104 = arith.index_cast %c1_i32 : i32 to index
    %c0_35 = arith.constant 0 : index
    %c0_36 = arith.constant 0 : index
    %105 = vector.load %arg11[%104, %c0_35, %c0_36] : memref<8x4x32xf32, #tpu.memory_space<vmem>>, vector<1x4x32xf32>
    %106 = vector.shape_cast %105 : vector<1x4x32xf32> to vector<4x32xf32>
    %107 = vector.shape_cast %103 : vector<4x32xf32> to vector<1x4x32xf32>
    tpu.vector_store %arg11[%104, %c0_35, %c0_36], %107 {strides = array<i32>} : memref<8x4x32xf32, #tpu.memory_space<vmem>>, vector<1x4x32xf32>,
    %108 = vector.extract_strided_slice %102 {offsets = [4, 0], sizes = [4, 32], strides = [1, 1]} : vector<8x32xf32> to vector<4x32xf32>
    %c7_i32_37 = arith.constant 7 : i32
    %109 = arith.subi %c7_i32_37, %c1_i32 : i32
    %110 = arith.index_cast %109 : i32 to index
    %c0_38 = arith.constant 0 : index
    %c0_39 = arith.constant 0 : index
    %111 = vector.load %arg12[%110, %c0_38, %c0_39] : memref<8x4x32xf32, #tpu.memory_space<vmem>>, vector<1x4x32xf32>
    %112 = vector.shape_cast %111 : vector<1x4x32xf32> to vector<4x32xf32>
    %113 = vector.shape_cast %108 : vector<4x32xf32> to vector<1x4x32xf32>
    tpu.vector_store %arg12[%110, %c0_38, %c0_39], %113 {strides = array<i32>} : memref<8x4x32xf32, #tpu.memory_space<vmem>>, vector<1x4x32xf32>,
    %c2_i32 = arith.constant 2 : i32
    %114 = arith.index_cast %c2_i32 : i32 to index
    %c0_40 = arith.constant 0 : index
    %c0_41 = arith.constant 0 : index
    %115 = vector.load %arg10[%114, %c0_40, %c0_41] : memref<8x4x256xf32, #tpu.memory_space<vmem>>, vector<1x4x256xf32>
    %116 = vector.shape_cast %115 : vector<1x4x256xf32> to vector<4x256xf32>
    %c7_i32_42 = arith.constant 7 : i32
    %117 = arith.subi %c7_i32_42, %c2_i32 : i32
    %118 = arith.index_cast %117 : i32 to index
    %c0_43 = arith.constant 0 : index
    %c0_44 = arith.constant 0 : index
    %119 = vector.load %arg10[%118, %c0_43, %c0_44] : memref<8x4x256xf32, #tpu.memory_space<vmem>>, vector<1x4x256xf32>
    %120 = vector.shape_cast %119 : vector<1x4x256xf32> to vector<4x256xf32>
    %cst_45 = arith.constant dense<0.000000e+00> : vector<8x256xf32>
    %121 = tpu.matmul %102, %9, %cst_45 {dimension_numbers = #tpu.dot_dimension_numbers<[1], [0], [0], [1], [0, 0, 1, 1], [], []>} : vector<8x32xf32>, vector<32x256xf32>, vector<8x256xf32> -> vector<8x256xf32>
    %122 = vector.extract_strided_slice %116 {offsets = [0, 0], sizes = [4, 128], strides = [1, 1]} : vector<4x256xf32> to vector<4x128xf32>
    %123 = vector.extract_strided_slice %121 {offsets = [0, 0], sizes = [4, 128], strides = [1, 1]} : vector<8x256xf32> to vector<4x128xf32>
    %124 = arith.addf %122, %123 : vector<4x128xf32>
    %125 = vector.extract_strided_slice %120 {offsets = [0, 128], sizes = [4, 128], strides = [1, 1]} : vector<4x256xf32> to vector<4x128xf32>
    %126 = vector.extract_strided_slice %121 {offsets = [4, 128], sizes = [4, 128], strides = [1, 1]} : vector<8x256xf32> to vector<4x128xf32>
    %127 = arith.addf %125, %126 : vector<4x128xf32>
    %128 = tpu.concatenate %124, %127 in 0 : vector<4x128xf32>, vector<4x128xf32> -> vector<8x128xf32>
    %129 = vector.extract_strided_slice %128 {offsets = [0, 0], sizes = [8, 32], strides = [1, 1]} : vector<8x128xf32> to vector<8x32xf32>
    %130 = arith.negf %129 : vector<8x32xf32>
    %131 = math.exp %130 : vector<8x32xf32>
    %cst_46 = arith.constant 1.000000e+00 : f32
    %132 = vector.broadcast %cst_46 : f32 to vector<8x32xf32>
    %133 = arith.addf %132, %131 : vector<8x32xf32>
    %134 = arith.divf %132, %133 : vector<8x32xf32>
    %135 = vector.extract_strided_slice %128 {offsets = [0, 32], sizes = [8, 32], strides = [1, 1]} : vector<8x128xf32> to vector<8x32xf32>
    %136 = arith.negf %135 : vector<8x32xf32>
    %137 = math.exp %136 : vector<8x32xf32>
    %cst_47 = arith.constant 1.000000e+00 : f32
    %138 = vector.broadcast %cst_47 : f32 to vector<8x32xf32>
    %139 = arith.addf %138, %137 : vector<8x32xf32>
    %140 = arith.divf %138, %139 : vector<8x32xf32>
    %141 = vector.extract_strided_slice %128 {offsets = [0, 64], sizes = [8, 32], strides = [1, 1]} : vector<8x128xf32> to vector<8x32xf32>
    %142 = math.tanh %141 : vector<8x32xf32>
    %143 = vector.extract_strided_slice %128 {offsets = [0, 96], sizes = [8, 32], strides = [1, 1]} : vector<8x128xf32> to vector<8x32xf32>
    %144 = arith.negf %143 : vector<8x32xf32>
    %145 = math.exp %144 : vector<8x32xf32>
    %cst_48 = arith.constant 1.000000e+00 : f32
    %146 = vector.broadcast %cst_48 : f32 to vector<8x32xf32>
    %147 = arith.addf %146, %145 : vector<8x32xf32>
    %148 = arith.divf %146, %147 : vector<8x32xf32>
    %149 = arith.mulf %140, %100 : vector<8x32xf32>
    %150 = arith.mulf %134, %142 : vector<8x32xf32>
    %151 = arith.addf %149, %150 : vector<8x32xf32>
    %152 = math.tanh %151 : vector<8x32xf32>
    %153 = arith.mulf %148, %152 : vector<8x32xf32>
    %154 = vector.extract_strided_slice %153 {offsets = [0, 0], sizes = [4, 32], strides = [1, 1]} : vector<8x32xf32> to vector<4x32xf32>
    %155 = arith.index_cast %c2_i32 : i32 to index
    %c0_49 = arith.constant 0 : index
    %c0_50 = arith.constant 0 : index
    %156 = vector.load %arg11[%155, %c0_49, %c0_50] : memref<8x4x32xf32, #tpu.memory_space<vmem>>, vector<1x4x32xf32>
    %157 = vector.shape_cast %156 : vector<1x4x32xf32> to vector<4x32xf32>
    %158 = vector.shape_cast %154 : vector<4x32xf32> to vector<1x4x32xf32>
    tpu.vector_store %arg11[%155, %c0_49, %c0_50], %158 {strides = array<i32>} : memref<8x4x32xf32, #tpu.memory_space<vmem>>, vector<1x4x32xf32>,
    %159 = vector.extract_strided_slice %153 {offsets = [4, 0], sizes = [4, 32], strides = [1, 1]} : vector<8x32xf32> to vector<4x32xf32>
    %c7_i32_51 = arith.constant 7 : i32
    %160 = arith.subi %c7_i32_51, %c2_i32 : i32
    %161 = arith.index_cast %160 : i32 to index
    %c0_52 = arith.constant 0 : index
    %c0_53 = arith.constant 0 : index
    %162 = vector.load %arg12[%161, %c0_52, %c0_53] : memref<8x4x32xf32, #tpu.memory_space<vmem>>, vector<1x4x32xf32>
    %163 = vector.shape_cast %162 : vector<1x4x32xf32> to vector<4x32xf32>
    %164 = vector.shape_cast %159 : vector<4x32xf32> to vector<1x4x32xf32>
    tpu.vector_store %arg12[%161, %c0_52, %c0_53], %164 {strides = array<i32>} : memref<8x4x32xf32, #tpu.memory_space<vmem>>, vector<1x4x32xf32>,
    %c3_i32 = arith.constant 3 : i32
    %165 = arith.index_cast %c3_i32 : i32 to index
    %c0_54 = arith.constant 0 : index
    %c0_55 = arith.constant 0 : index
    %166 = vector.load %arg10[%165, %c0_54, %c0_55] : memref<8x4x256xf32, #tpu.memory_space<vmem>>, vector<1x4x256xf32>
    %167 = vector.shape_cast %166 : vector<1x4x256xf32> to vector<4x256xf32>
    %c7_i32_56 = arith.constant 7 : i32
    %168 = arith.subi %c7_i32_56, %c3_i32 : i32
    %169 = arith.index_cast %168 : i32 to index
    %c0_57 = arith.constant 0 : index
    %c0_58 = arith.constant 0 : index
    %170 = vector.load %arg10[%169, %c0_57, %c0_58] : memref<8x4x256xf32, #tpu.memory_space<vmem>>, vector<1x4x256xf32>
    %171 = vector.shape_cast %170 : vector<1x4x256xf32> to vector<4x256xf32>
    %cst_59 = arith.constant dense<0.000000e+00> : vector<8x256xf32>
    %172 = tpu.matmul %153, %9, %cst_59 {dimension_numbers = #tpu.dot_dimension_numbers<[1], [0], [0], [1], [0, 0, 1, 1], [], []>} : vector<8x32xf32>, vector<32x256xf32>, vector<8x256xf32> -> vector<8x256xf32>
    %173 = vector.extract_strided_slice %167 {offsets = [0, 0], sizes = [4, 128], strides = [1, 1]} : vector<4x256xf32> to vector<4x128xf32>
    %174 = vector.extract_strided_slice %172 {offsets = [0, 0], sizes = [4, 128], strides = [1, 1]} : vector<8x256xf32> to vector<4x128xf32>
    %175 = arith.addf %173, %174 : vector<4x128xf32>
    %176 = vector.extract_strided_slice %171 {offsets = [0, 128], sizes = [4, 128], strides = [1, 1]} : vector<4x256xf32> to vector<4x128xf32>
    %177 = vector.extract_strided_slice %172 {offsets = [4, 128], sizes = [4, 128], strides = [1, 1]} : vector<8x256xf32> to vector<4x128xf32>
    %178 = arith.addf %176, %177 : vector<4x128xf32>
    %179 = tpu.concatenate %175, %178 in 0 : vector<4x128xf32>, vector<4x128xf32> -> vector<8x128xf32>
    %180 = vector.extract_strided_slice %179 {offsets = [0, 0], sizes = [8, 32], strides = [1, 1]} : vector<8x128xf32> to vector<8x32xf32>
    %181 = arith.negf %180 : vector<8x32xf32>
    %182 = math.exp %181 : vector<8x32xf32>
    %cst_60 = arith.constant 1.000000e+00 : f32
    %183 = vector.broadcast %cst_60 : f32 to vector<8x32xf32>
    %184 = arith.addf %183, %182 : vector<8x32xf32>
    %185 = arith.divf %183, %184 : vector<8x32xf32>
    %186 = vector.extract_strided_slice %179 {offsets = [0, 32], sizes = [8, 32], strides = [1, 1]} : vector<8x128xf32> to vector<8x32xf32>
    %187 = arith.negf %186 : vector<8x32xf32>
    %188 = math.exp %187 : vector<8x32xf32>
    %cst_61 = arith.constant 1.000000e+00 : f32
    %189 = vector.broadcast %cst_61 : f32 to vector<8x32xf32>
    %190 = arith.addf %189, %188 : vector<8x32xf32>
    %191 = arith.divf %189, %190 : vector<8x32xf32>
    %192 = vector.extract_strided_slice %179 {offsets = [0, 64], sizes = [8, 32], strides = [1, 1]} : vector<8x128xf32> to vector<8x32xf32>
    %193 = math.tanh %192 : vector<8x32xf32>
    %194 = vector.extract_strided_slice %179 {offsets = [0, 96], sizes = [8, 32], strides = [1, 1]} : vector<8x128xf32> to vector<8x32xf32>
    %195 = arith.negf %194 : vector<8x32xf32>
    %196 = math.exp %195 : vector<8x32xf32>
    %cst_62 = arith.constant 1.000000e+00 : f32
    %197 = vector.broadcast %cst_62 : f32 to vector<8x32xf32>
    %198 = arith.addf %197, %196 : vector<8x32xf32>
    %199 = arith.divf %197, %198 : vector<8x32xf32>
    %200 = arith.mulf %191, %151 : vector<8x32xf32>
    %201 = arith.mulf %185, %193 : vector<8x32xf32>
    %202 = arith.addf %200, %201 : vector<8x32xf32>
    %203 = math.tanh %202 : vector<8x32xf32>
    %204 = arith.mulf %199, %203 : vector<8x32xf32>
    %205 = vector.extract_strided_slice %204 {offsets = [0, 0], sizes = [4, 32], strides = [1, 1]} : vector<8x32xf32> to vector<4x32xf32>
    %206 = arith.index_cast %c3_i32 : i32 to index
    %c0_63 = arith.constant 0 : index
    %c0_64 = arith.constant 0 : index
    %207 = vector.load %arg11[%206, %c0_63, %c0_64] : memref<8x4x32xf32, #tpu.memory_space<vmem>>, vector<1x4x32xf32>
    %208 = vector.shape_cast %207 : vector<1x4x32xf32> to vector<4x32xf32>
    %209 = vector.shape_cast %205 : vector<4x32xf32> to vector<1x4x32xf32>
    tpu.vector_store %arg11[%206, %c0_63, %c0_64], %209 {strides = array<i32>} : memref<8x4x32xf32, #tpu.memory_space<vmem>>, vector<1x4x32xf32>,
    %210 = vector.extract_strided_slice %204 {offsets = [4, 0], sizes = [4, 32], strides = [1, 1]} : vector<8x32xf32> to vector<4x32xf32>
    %c7_i32_65 = arith.constant 7 : i32
    %211 = arith.subi %c7_i32_65, %c3_i32 : i32
    %212 = arith.index_cast %211 : i32 to index
    %c0_66 = arith.constant 0 : index
    %c0_67 = arith.constant 0 : index
    %213 = vector.load %arg12[%212, %c0_66, %c0_67] : memref<8x4x32xf32, #tpu.memory_space<vmem>>, vector<1x4x32xf32>
    %214 = vector.shape_cast %213 : vector<1x4x32xf32> to vector<4x32xf32>
    %215 = vector.shape_cast %210 : vector<4x32xf32> to vector<1x4x32xf32>
    tpu.vector_store %arg12[%212, %c0_66, %c0_67], %215 {strides = array<i32>} : memref<8x4x32xf32, #tpu.memory_space<vmem>>, vector<1x4x32xf32>,
    %c4_i32 = arith.constant 4 : i32
    %216 = arith.index_cast %c4_i32 : i32 to index
    %c0_68 = arith.constant 0 : index
    %c0_69 = arith.constant 0 : index
    %217 = vector.load %arg10[%216, %c0_68, %c0_69] : memref<8x4x256xf32, #tpu.memory_space<vmem>>, vector<1x4x256xf32>
    %218 = vector.shape_cast %217 : vector<1x4x256xf32> to vector<4x256xf32>
    %c7_i32_70 = arith.constant 7 : i32
    %219 = arith.subi %c7_i32_70, %c4_i32 : i32
    %220 = arith.index_cast %219 : i32 to index
    %c0_71 = arith.constant 0 : index
    %c0_72 = arith.constant 0 : index
    %221 = vector.load %arg10[%220, %c0_71, %c0_72] : memref<8x4x256xf32, #tpu.memory_space<vmem>>, vector<1x4x256xf32>
    %222 = vector.shape_cast %221 : vector<1x4x256xf32> to vector<4x256xf32>
    %cst_73 = arith.constant dense<0.000000e+00> : vector<8x256xf32>
    %223 = tpu.matmul %204, %9, %cst_73 {dimension_numbers = #tpu.dot_dimension_numbers<[1], [0], [0], [1], [0, 0, 1, 1], [], []>} : vector<8x32xf32>, vector<32x256xf32>, vector<8x256xf32> -> vector<8x256xf32>
    %224 = vector.extract_strided_slice %218 {offsets = [0, 0], sizes = [4, 128], strides = [1, 1]} : vector<4x256xf32> to vector<4x128xf32>
    %225 = vector.extract_strided_slice %223 {offsets = [0, 0], sizes = [4, 128], strides = [1, 1]} : vector<8x256xf32> to vector<4x128xf32>
    %226 = arith.addf %224, %225 : vector<4x128xf32>
    %227 = vector.extract_strided_slice %222 {offsets = [0, 128], sizes = [4, 128], strides = [1, 1]} : vector<4x256xf32> to vector<4x128xf32>
    %228 = vector.extract_strided_slice %223 {offsets = [4, 128], sizes = [4, 128], strides = [1, 1]} : vector<8x256xf32> to vector<4x128xf32>
    %229 = arith.addf %227, %228 : vector<4x128xf32>
    %230 = tpu.concatenate %226, %229 in 0 : vector<4x128xf32>, vector<4x128xf32> -> vector<8x128xf32>
    %231 = vector.extract_strided_slice %230 {offsets = [0, 0], sizes = [8, 32], strides = [1, 1]} : vector<8x128xf32> to vector<8x32xf32>
    %232 = arith.negf %231 : vector<8x32xf32>
    %233 = math.exp %232 : vector<8x32xf32>
    %cst_74 = arith.constant 1.000000e+00 : f32
    %234 = vector.broadcast %cst_74 : f32 to vector<8x32xf32>
    %235 = arith.addf %234, %233 : vector<8x32xf32>
    %236 = arith.divf %234, %235 : vector<8x32xf32>
    %237 = vector.extract_strided_slice %230 {offsets = [0, 32], sizes = [8, 32], strides = [1, 1]} : vector<8x128xf32> to vector<8x32xf32>
    %238 = arith.negf %237 : vector<8x32xf32>
    %239 = math.exp %238 : vector<8x32xf32>
    %cst_75 = arith.constant 1.000000e+00 : f32
    %240 = vector.broadcast %cst_75 : f32 to vector<8x32xf32>
    %241 = arith.addf %240, %239 : vector<8x32xf32>
    %242 = arith.divf %240, %241 : vector<8x32xf32>
    %243 = vector.extract_strided_slice %230 {offsets = [0, 64], sizes = [8, 32], strides = [1, 1]} : vector<8x128xf32> to vector<8x32xf32>
    %244 = math.tanh %243 : vector<8x32xf32>
    %245 = vector.extract_strided_slice %230 {offsets = [0, 96], sizes = [8, 32], strides = [1, 1]} : vector<8x128xf32> to vector<8x32xf32>
    %246 = arith.negf %245 : vector<8x32xf32>
    %247 = math.exp %246 : vector<8x32xf32>
    %cst_76 = arith.constant 1.000000e+00 : f32
    %248 = vector.broadcast %cst_76 : f32 to vector<8x32xf32>
    %249 = arith.addf %248, %247 : vector<8x32xf32>
    %250 = arith.divf %248, %249 : vector<8x32xf32>
    %251 = arith.mulf %242, %202 : vector<8x32xf32>
    %252 = arith.mulf %236, %244 : vector<8x32xf32>
    %253 = arith.addf %251, %252 : vector<8x32xf32>
    %254 = math.tanh %253 : vector<8x32xf32>
    %255 = arith.mulf %250, %254 : vector<8x32xf32>
    %256 = vector.extract_strided_slice %255 {offsets = [0, 0], sizes = [4, 32], strides = [1, 1]} : vector<8x32xf32> to vector<4x32xf32>
    %257 = arith.index_cast %c4_i32 : i32 to index
    %c0_77 = arith.constant 0 : index
    %c0_78 = arith.constant 0 : index
    %258 = vector.load %arg11[%257, %c0_77, %c0_78] : memref<8x4x32xf32, #tpu.memory_space<vmem>>, vector<1x4x32xf32>
    %259 = vector.shape_cast %258 : vector<1x4x32xf32> to vector<4x32xf32>
    %260 = vector.shape_cast %256 : vector<4x32xf32> to vector<1x4x32xf32>
    tpu.vector_store %arg11[%257, %c0_77, %c0_78], %260 {strides = array<i32>} : memref<8x4x32xf32, #tpu.memory_space<vmem>>, vector<1x4x32xf32>,
    %261 = vector.extract_strided_slice %255 {offsets = [4, 0], sizes = [4, 32], strides = [1, 1]} : vector<8x32xf32> to vector<4x32xf32>
    %c7_i32_79 = arith.constant 7 : i32
    %262 = arith.subi %c7_i32_79, %c4_i32 : i32
    %263 = arith.index_cast %262 : i32 to index
    %c0_80 = arith.constant 0 : index
    %c0_81 = arith.constant 0 : index
    %264 = vector.load %arg12[%263, %c0_80, %c0_81] : memref<8x4x32xf32, #tpu.memory_space<vmem>>, vector<1x4x32xf32>
    %265 = vector.shape_cast %264 : vector<1x4x32xf32> to vector<4x32xf32>
    %266 = vector.shape_cast %261 : vector<4x32xf32> to vector<1x4x32xf32>
    tpu.vector_store %arg12[%263, %c0_80, %c0_81], %266 {strides = array<i32>} : memref<8x4x32xf32, #tpu.memory_space<vmem>>, vector<1x4x32xf32>,
    %c5_i32 = arith.constant 5 : i32
    %267 = arith.index_cast %c5_i32 : i32 to index
    %c0_82 = arith.constant 0 : index
    %c0_83 = arith.constant 0 : index
    %268 = vector.load %arg10[%267, %c0_82, %c0_83] : memref<8x4x256xf32, #tpu.memory_space<vmem>>, vector<1x4x256xf32>
    %269 = vector.shape_cast %268 : vector<1x4x256xf32> to vector<4x256xf32>
    %c7_i32_84 = arith.constant 7 : i32
    %270 = arith.subi %c7_i32_84, %c5_i32 : i32
    %271 = arith.index_cast %270 : i32 to index
    %c0_85 = arith.constant 0 : index
    %c0_86 = arith.constant 0 : index
    %272 = vector.load %arg10[%271, %c0_85, %c0_86] : memref<8x4x256xf32, #tpu.memory_space<vmem>>, vector<1x4x256xf32>
    %273 = vector.shape_cast %272 : vector<1x4x256xf32> to vector<4x256xf32>
    %cst_87 = arith.constant dense<0.000000e+00> : vector<8x256xf32>
    %274 = tpu.matmul %255, %9, %cst_87 {dimension_numbers = #tpu.dot_dimension_numbers<[1], [0], [0], [1], [0, 0, 1, 1], [], []>} : vector<8x32xf32>, vector<32x256xf32>, vector<8x256xf32> -> vector<8x256xf32>
    %275 = vector.extract_strided_slice %269 {offsets = [0, 0], sizes = [4, 128], strides = [1, 1]} : vector<4x256xf32> to vector<4x128xf32>
    %276 = vector.extract_strided_slice %274 {offsets = [0, 0], sizes = [4, 128], strides = [1, 1]} : vector<8x256xf32> to vector<4x128xf32>
    %277 = arith.addf %275, %276 : vector<4x128xf32>
    %278 = vector.extract_strided_slice %273 {offsets = [0, 128], sizes = [4, 128], strides = [1, 1]} : vector<4x256xf32> to vector<4x128xf32>
    %279 = vector.extract_strided_slice %274 {offsets = [4, 128], sizes = [4, 128], strides = [1, 1]} : vector<8x256xf32> to vector<4x128xf32>
    %280 = arith.addf %278, %279 : vector<4x128xf32>
    %281 = tpu.concatenate %277, %280 in 0 : vector<4x128xf32>, vector<4x128xf32> -> vector<8x128xf32>
    %282 = vector.extract_strided_slice %281 {offsets = [0, 0], sizes = [8, 32], strides = [1, 1]} : vector<8x128xf32> to vector<8x32xf32>
    %283 = arith.negf %282 : vector<8x32xf32>
    %284 = math.exp %283 : vector<8x32xf32>
    %cst_88 = arith.constant 1.000000e+00 : f32
    %285 = vector.broadcast %cst_88 : f32 to vector<8x32xf32>
    %286 = arith.addf %285, %284 : vector<8x32xf32>
    %287 = arith.divf %285, %286 : vector<8x32xf32>
    %288 = vector.extract_strided_slice %281 {offsets = [0, 32], sizes = [8, 32], strides = [1, 1]} : vector<8x128xf32> to vector<8x32xf32>
    %289 = arith.negf %288 : vector<8x32xf32>
    %290 = math.exp %289 : vector<8x32xf32>
    %cst_89 = arith.constant 1.000000e+00 : f32
    %291 = vector.broadcast %cst_89 : f32 to vector<8x32xf32>
    %292 = arith.addf %291, %290 : vector<8x32xf32>
    %293 = arith.divf %291, %292 : vector<8x32xf32>
    %294 = vector.extract_strided_slice %281 {offsets = [0, 64], sizes = [8, 32], strides = [1, 1]} : vector<8x128xf32> to vector<8x32xf32>
    %295 = math.tanh %294 : vector<8x32xf32>
    %296 = vector.extract_strided_slice %281 {offsets = [0, 96], sizes = [8, 32], strides = [1, 1]} : vector<8x128xf32> to vector<8x32xf32>
    %297 = arith.negf %296 : vector<8x32xf32>
    %298 = math.exp %297 : vector<8x32xf32>
    %cst_90 = arith.constant 1.000000e+00 : f32
    %299 = vector.broadcast %cst_90 : f32 to vector<8x32xf32>
    %300 = arith.addf %299, %298 : vector<8x32xf32>
    %301 = arith.divf %299, %300 : vector<8x32xf32>
    %302 = arith.mulf %293, %253 : vector<8x32xf32>
    %303 = arith.mulf %287, %295 : vector<8x32xf32>
    %304 = arith.addf %302, %303 : vector<8x32xf32>
    %305 = math.tanh %304 : vector<8x32xf32>
    %306 = arith.mulf %301, %305 : vector<8x32xf32>
    %307 = vector.extract_strided_slice %306 {offsets = [0, 0], sizes = [4, 32], strides = [1, 1]} : vector<8x32xf32> to vector<4x32xf32>
    %308 = arith.index_cast %c5_i32 : i32 to index
    %c0_91 = arith.constant 0 : index
    %c0_92 = arith.constant 0 : index
    %309 = vector.load %arg11[%308, %c0_91, %c0_92] : memref<8x4x32xf32, #tpu.memory_space<vmem>>, vector<1x4x32xf32>
    %310 = vector.shape_cast %309 : vector<1x4x32xf32> to vector<4x32xf32>
    %311 = vector.shape_cast %307 : vector<4x32xf32> to vector<1x4x32xf32>
    tpu.vector_store %arg11[%308, %c0_91, %c0_92], %311 {strides = array<i32>} : memref<8x4x32xf32, #tpu.memory_space<vmem>>, vector<1x4x32xf32>,
    %312 = vector.extract_strided_slice %306 {offsets = [4, 0], sizes = [4, 32], strides = [1, 1]} : vector<8x32xf32> to vector<4x32xf32>
    %c7_i32_93 = arith.constant 7 : i32
    %313 = arith.subi %c7_i32_93, %c5_i32 : i32
    %314 = arith.index_cast %313 : i32 to index
    %c0_94 = arith.constant 0 : index
    %c0_95 = arith.constant 0 : index
    %315 = vector.load %arg12[%314, %c0_94, %c0_95] : memref<8x4x32xf32, #tpu.memory_space<vmem>>, vector<1x4x32xf32>
    %316 = vector.shape_cast %315 : vector<1x4x32xf32> to vector<4x32xf32>
    %317 = vector.shape_cast %312 : vector<4x32xf32> to vector<1x4x32xf32>
    tpu.vector_store %arg12[%314, %c0_94, %c0_95], %317 {strides = array<i32>} : memref<8x4x32xf32, #tpu.memory_space<vmem>>, vector<1x4x32xf32>,
    %c6_i32 = arith.constant 6 : i32
    %318 = arith.index_cast %c6_i32 : i32 to index
    %c0_96 = arith.constant 0 : index
    %c0_97 = arith.constant 0 : index
    %319 = vector.load %arg10[%318, %c0_96, %c0_97] : memref<8x4x256xf32, #tpu.memory_space<vmem>>, vector<1x4x256xf32>
    %320 = vector.shape_cast %319 : vector<1x4x256xf32> to vector<4x256xf32>
    %c7_i32_98 = arith.constant 7 : i32
    %321 = arith.subi %c7_i32_98, %c6_i32 : i32
    %322 = arith.index_cast %321 : i32 to index
    %c0_99 = arith.constant 0 : index
    %c0_100 = arith.constant 0 : index
    %323 = vector.load %arg10[%322, %c0_99, %c0_100] : memref<8x4x256xf32, #tpu.memory_space<vmem>>, vector<1x4x256xf32>
    %324 = vector.shape_cast %323 : vector<1x4x256xf32> to vector<4x256xf32>
    %cst_101 = arith.constant dense<0.000000e+00> : vector<8x256xf32>
    %325 = tpu.matmul %306, %9, %cst_101 {dimension_numbers = #tpu.dot_dimension_numbers<[1], [0], [0], [1], [0, 0, 1, 1], [], []>} : vector<8x32xf32>, vector<32x256xf32>, vector<8x256xf32> -> vector<8x256xf32>
    %326 = vector.extract_strided_slice %320 {offsets = [0, 0], sizes = [4, 128], strides = [1, 1]} : vector<4x256xf32> to vector<4x128xf32>
    %327 = vector.extract_strided_slice %325 {offsets = [0, 0], sizes = [4, 128], strides = [1, 1]} : vector<8x256xf32> to vector<4x128xf32>
    %328 = arith.addf %326, %327 : vector<4x128xf32>
    %329 = vector.extract_strided_slice %324 {offsets = [0, 128], sizes = [4, 128], strides = [1, 1]} : vector<4x256xf32> to vector<4x128xf32>
    %330 = vector.extract_strided_slice %325 {offsets = [4, 128], sizes = [4, 128], strides = [1, 1]} : vector<8x256xf32> to vector<4x128xf32>
    %331 = arith.addf %329, %330 : vector<4x128xf32>
    %332 = tpu.concatenate %328, %331 in 0 : vector<4x128xf32>, vector<4x128xf32> -> vector<8x128xf32>
    %333 = vector.extract_strided_slice %332 {offsets = [0, 0], sizes = [8, 32], strides = [1, 1]} : vector<8x128xf32> to vector<8x32xf32>
    %334 = arith.negf %333 : vector<8x32xf32>
    %335 = math.exp %334 : vector<8x32xf32>
    %cst_102 = arith.constant 1.000000e+00 : f32
    %336 = vector.broadcast %cst_102 : f32 to vector<8x32xf32>
    %337 = arith.addf %336, %335 : vector<8x32xf32>
    %338 = arith.divf %336, %337 : vector<8x32xf32>
    %339 = vector.extract_strided_slice %332 {offsets = [0, 32], sizes = [8, 32], strides = [1, 1]} : vector<8x128xf32> to vector<8x32xf32>
    %340 = arith.negf %339 : vector<8x32xf32>
    %341 = math.exp %340 : vector<8x32xf32>
    %cst_103 = arith.constant 1.000000e+00 : f32
    %342 = vector.broadcast %cst_103 : f32 to vector<8x32xf32>
    %343 = arith.addf %342, %341 : vector<8x32xf32>
    %344 = arith.divf %342, %343 : vector<8x32xf32>
    %345 = vector.extract_strided_slice %332 {offsets = [0, 64], sizes = [8, 32], strides = [1, 1]} : vector<8x128xf32> to vector<8x32xf32>
    %346 = math.tanh %345 : vector<8x32xf32>
    %347 = vector.extract_strided_slice %332 {offsets = [0, 96], sizes = [8, 32], strides = [1, 1]} : vector<8x128xf32> to vector<8x32xf32>
    %348 = arith.negf %347 : vector<8x32xf32>
    %349 = math.exp %348 : vector<8x32xf32>
    %cst_104 = arith.constant 1.000000e+00 : f32
    %350 = vector.broadcast %cst_104 : f32 to vector<8x32xf32>
    %351 = arith.addf %350, %349 : vector<8x32xf32>
    %352 = arith.divf %350, %351 : vector<8x32xf32>
    %353 = arith.mulf %344, %304 : vector<8x32xf32>
    %354 = arith.mulf %338, %346 : vector<8x32xf32>
    %355 = arith.addf %353, %354 : vector<8x32xf32>
    %356 = math.tanh %355 : vector<8x32xf32>
    %357 = arith.mulf %352, %356 : vector<8x32xf32>
    %358 = vector.extract_strided_slice %357 {offsets = [0, 0], sizes = [4, 32], strides = [1, 1]} : vector<8x32xf32> to vector<4x32xf32>
    %359 = arith.index_cast %c6_i32 : i32 to index
    %c0_105 = arith.constant 0 : index
    %c0_106 = arith.constant 0 : index
    %360 = vector.load %arg11[%359, %c0_105, %c0_106] : memref<8x4x32xf32, #tpu.memory_space<vmem>>, vector<1x4x32xf32>
    %361 = vector.shape_cast %360 : vector<1x4x32xf32> to vector<4x32xf32>
    %362 = vector.shape_cast %358 : vector<4x32xf32> to vector<1x4x32xf32>
    tpu.vector_store %arg11[%359, %c0_105, %c0_106], %362 {strides = array<i32>} : memref<8x4x32xf32, #tpu.memory_space<vmem>>, vector<1x4x32xf32>,
    %363 = vector.extract_strided_slice %357 {offsets = [4, 0], sizes = [4, 32], strides = [1, 1]} : vector<8x32xf32> to vector<4x32xf32>
    %c7_i32_107 = arith.constant 7 : i32
    %364 = arith.subi %c7_i32_107, %c6_i32 : i32
    %365 = arith.index_cast %364 : i32 to index
    %c0_108 = arith.constant 0 : index
    %c0_109 = arith.constant 0 : index
    %366 = vector.load %arg12[%365, %c0_108, %c0_109] : memref<8x4x32xf32, #tpu.memory_space<vmem>>, vector<1x4x32xf32>
    %367 = vector.shape_cast %366 : vector<1x4x32xf32> to vector<4x32xf32>
    %368 = vector.shape_cast %363 : vector<4x32xf32> to vector<1x4x32xf32>
    tpu.vector_store %arg12[%365, %c0_108, %c0_109], %368 {strides = array<i32>} : memref<8x4x32xf32, #tpu.memory_space<vmem>>, vector<1x4x32xf32>,
    %c7_i32_110 = arith.constant 7 : i32
    %369 = arith.index_cast %c7_i32_110 : i32 to index
    %c0_111 = arith.constant 0 : index
    %c0_112 = arith.constant 0 : index
    %370 = vector.load %arg10[%369, %c0_111, %c0_112] : memref<8x4x256xf32, #tpu.memory_space<vmem>>, vector<1x4x256xf32>
    %371 = vector.shape_cast %370 : vector<1x4x256xf32> to vector<4x256xf32>
    %c7_i32_113 = arith.constant 7 : i32
    %372 = arith.subi %c7_i32_113, %c7_i32_110 : i32
    %373 = arith.index_cast %372 : i32 to index
    %c0_114 = arith.constant 0 : index
    %c0_115 = arith.constant 0 : index
    %374 = vector.load %arg10[%373, %c0_114, %c0_115] : memref<8x4x256xf32, #tpu.memory_space<vmem>>, vector<1x4x256xf32>
    %375 = vector.shape_cast %374 : vector<1x4x256xf32> to vector<4x256xf32>
    %cst_116 = arith.constant dense<0.000000e+00> : vector<8x256xf32>
    %376 = tpu.matmul %357, %9, %cst_116 {dimension_numbers = #tpu.dot_dimension_numbers<[1], [0], [0], [1], [0, 0, 1, 1], [], []>} : vector<8x32xf32>, vector<32x256xf32>, vector<8x256xf32> -> vector<8x256xf32>
    %377 = vector.extract_strided_slice %371 {offsets = [0, 0], sizes = [4, 128], strides = [1, 1]} : vector<4x256xf32> to vector<4x128xf32>
    %378 = vector.extract_strided_slice %376 {offsets = [0, 0], sizes = [4, 128], strides = [1, 1]} : vector<8x256xf32> to vector<4x128xf32>
    %379 = arith.addf %377, %378 : vector<4x128xf32>
    %380 = vector.extract_strided_slice %375 {offsets = [0, 128], sizes = [4, 128], strides = [1, 1]} : vector<4x256xf32> to vector<4x128xf32>
    %381 = vector.extract_strided_slice %376 {offsets = [4, 128], sizes = [4, 128], strides = [1, 1]} : vector<8x256xf32> to vector<4x128xf32>
    %382 = arith.addf %380, %381 : vector<4x128xf32>
    %383 = tpu.concatenate %379, %382 in 0 : vector<4x128xf32>, vector<4x128xf32> -> vector<8x128xf32>
    %384 = vector.extract_strided_slice %383 {offsets = [0, 0], sizes = [8, 32], strides = [1, 1]} : vector<8x128xf32> to vector<8x32xf32>
    %385 = arith.negf %384 : vector<8x32xf32>
    %386 = math.exp %385 : vector<8x32xf32>
    %cst_117 = arith.constant 1.000000e+00 : f32
    %387 = vector.broadcast %cst_117 : f32 to vector<8x32xf32>
    %388 = arith.addf %387, %386 : vector<8x32xf32>
    %389 = arith.divf %387, %388 : vector<8x32xf32>
    %390 = vector.extract_strided_slice %383 {offsets = [0, 32], sizes = [8, 32], strides = [1, 1]} : vector<8x128xf32> to vector<8x32xf32>
    %391 = arith.negf %390 : vector<8x32xf32>
    %392 = math.exp %391 : vector<8x32xf32>
    %cst_118 = arith.constant 1.000000e+00 : f32
    %393 = vector.broadcast %cst_118 : f32 to vector<8x32xf32>
    %394 = arith.addf %393, %392 : vector<8x32xf32>
    %395 = arith.divf %393, %394 : vector<8x32xf32>
    %396 = vector.extract_strided_slice %383 {offsets = [0, 64], sizes = [8, 32], strides = [1, 1]} : vector<8x128xf32> to vector<8x32xf32>
    %397 = math.tanh %396 : vector<8x32xf32>
    %398 = vector.extract_strided_slice %383 {offsets = [0, 96], sizes = [8, 32], strides = [1, 1]} : vector<8x128xf32> to vector<8x32xf32>
    %399 = arith.negf %398 : vector<8x32xf32>
    %400 = math.exp %399 : vector<8x32xf32>
    %cst_119 = arith.constant 1.000000e+00 : f32
    %401 = vector.broadcast %cst_119 : f32 to vector<8x32xf32>
    %402 = arith.addf %401, %400 : vector<8x32xf32>
    %403 = arith.divf %401, %402 : vector<8x32xf32>
    %404 = arith.mulf %395, %355 : vector<8x32xf32>
    %405 = arith.mulf %389, %397 : vector<8x32xf32>
    %406 = arith.addf %404, %405 : vector<8x32xf32>
    %407 = math.tanh %406 : vector<8x32xf32>
    %408 = arith.mulf %403, %407 : vector<8x32xf32>
    %409 = vector.extract_strided_slice %408 {offsets = [0, 0], sizes = [4, 32], strides = [1, 1]} : vector<8x32xf32> to vector<4x32xf32>
    %410 = arith.index_cast %c7_i32_110 : i32 to index
    %c0_120 = arith.constant 0 : index
    %c0_121 = arith.constant 0 : index
    %411 = vector.load %arg11[%410, %c0_120, %c0_121] : memref<8x4x32xf32, #tpu.memory_space<vmem>>, vector<1x4x32xf32>
    %412 = vector.shape_cast %411 : vector<1x4x32xf32> to vector<4x32xf32>
    %413 = vector.shape_cast %409 : vector<4x32xf32> to vector<1x4x32xf32>
    tpu.vector_store %arg11[%410, %c0_120, %c0_121], %413 {strides = array<i32>} : memref<8x4x32xf32, #tpu.memory_space<vmem>>, vector<1x4x32xf32>,
    %414 = vector.extract_strided_slice %408 {offsets = [4, 0], sizes = [4, 32], strides = [1, 1]} : vector<8x32xf32> to vector<4x32xf32>
    %c7_i32_122 = arith.constant 7 : i32
    %415 = arith.subi %c7_i32_122, %c7_i32_110 : i32
    %416 = arith.index_cast %415 : i32 to index
    %c0_123 = arith.constant 0 : index
    %c0_124 = arith.constant 0 : index
    %417 = vector.load %arg12[%416, %c0_123, %c0_124] : memref<8x4x32xf32, #tpu.memory_space<vmem>>, vector<1x4x32xf32>
    %418 = vector.shape_cast %417 : vector<1x4x32xf32> to vector<4x32xf32>
    %419 = vector.shape_cast %414 : vector<4x32xf32> to vector<1x4x32xf32>
    tpu.vector_store %arg12[%416, %c0_123, %c0_124], %419 {strides = array<i32>} : memref<8x4x32xf32, #tpu.memory_space<vmem>>, vector<1x4x32xf32>,
    %c8_i32 = arith.constant 8 : i32
    %c0_125 = arith.constant 0 : index
    %c0_126 = arith.constant 0 : index
    %c0_127 = arith.constant 0 : index
    %420 = vector.load %arg11[%c0_125, %c0_126, %c0_127] : memref<8x4x32xf32, #tpu.memory_space<vmem>>, vector<8x4x32xf32>
    %421 = vector.shape_cast %420 : vector<8x4x32xf32> to vector<32x32xf32>
    %c0_128 = arith.constant 0 : index
    %c0_129 = arith.constant 0 : index
    %c0_130 = arith.constant 0 : index
    %422 = vector.load %arg12[%c0_128, %c0_129, %c0_130] : memref<8x4x32xf32, #tpu.memory_space<vmem>>, vector<8x4x32xf32>
    %423 = vector.shape_cast %422 : vector<8x4x32xf32> to vector<32x32xf32>
    %c0_131 = arith.constant 0 : index
    %c0_132 = arith.constant 0 : index
    %424 = vector.load %arg4[%c0_131, %c0_132] : memref<64x256xf32, #tpu.memory_space<vmem>>, vector<32x256xf32>
    %cst_133 = arith.constant dense<0.000000e+00> : vector<32x256xf32>
    %425 = tpu.matmul %421, %424, %cst_133 {dimension_numbers = #tpu.dot_dimension_numbers<[1], [0], [0], [1], [0, 0, 1, 1], [], []>} : vector<32x32xf32>, vector<32x256xf32>, vector<32x256xf32> -> vector<32x256xf32>
    %c32 = arith.constant 32 : index
    %c0_134 = arith.constant 0 : index
    %426 = vector.load %arg4[%c32, %c0_134] : memref<64x256xf32, #tpu.memory_space<vmem>>, vector<32x256xf32>
    %cst_135 = arith.constant dense<0.000000e+00> : vector<32x256xf32>
    %427 = tpu.matmul %423, %426, %cst_135 {dimension_numbers = #tpu.dot_dimension_numbers<[1], [0], [0], [1], [0, 0, 1, 1], [], []>} : vector<32x32xf32>, vector<32x256xf32>, vector<32x256xf32> -> vector<32x256xf32>
    %428 = arith.addf %425, %427 : vector<32x256xf32>
    %c0_136 = arith.constant 0 : index
    %c0_137 = arith.constant 0 : index
    %429 = vector.load %arg6[%c0_136, %c0_137] : memref<1x256xf32, #tpu.memory_space<vmem>>, vector<1x256xf32>
    %430 = vector.broadcast %429 : vector<1x256xf32> to vector<32x256xf32>
    %431 = arith.addf %428, %430 : vector<32x256xf32>
    %432 = vector.shape_cast %431 : vector<32x256xf32> to vector<8x4x256xf32>
    %c0_138 = arith.constant 0 : index
    %c0_139 = arith.constant 0 : index
    %c0_140 = arith.constant 0 : index
    %433 = vector.load %arg10[%c0_138, %c0_139, %c0_140] : memref<8x4x256xf32, #tpu.memory_space<vmem>>, vector<8x4x256xf32>
    tpu.vector_store %arg10[%c0_138, %c0_139, %c0_140], %432 {strides = array<i32>} : memref<8x4x256xf32, #tpu.memory_space<vmem>>, vector<8x4x256xf32>,
    %c0_141 = arith.constant 0 : index
    %c0_142 = arith.constant 0 : index
    %434 = vector.load %arg5[%c0_141, %c0_142] : memref<32x256xf32, #tpu.memory_space<vmem>>, vector<32x256xf32>
    %cst_143 = arith.constant 0.000000e+00 : f32
    %435 = vector.broadcast %cst_143 : f32 to vector<8x32xf32>
    %cst_144 = arith.constant 0.000000e+00 : f32
    %436 = vector.broadcast %cst_144 : f32 to vector<8x32xf32>
    %c0_i32_145 = arith.constant 0 : i32
    %437 = arith.index_cast %c0_i32_145 : i32 to index
    %c0_146 = arith.constant 0 : index
    %c0_147 = arith.constant 0 : index
    %438 = vector.load %arg10[%437, %c0_146, %c0_147] : memref<8x4x256xf32, #tpu.memory_space<vmem>>, vector<1x4x256xf32>
    %439 = vector.shape_cast %438 : vector<1x4x256xf32> to vector<4x256xf32>
    %c7_i32_148 = arith.constant 7 : i32
    %440 = arith.subi %c7_i32_148, %c0_i32_145 : i32
    %441 = arith.index_cast %440 : i32 to index
    %c0_149 = arith.constant 0 : index
    %c0_150 = arith.constant 0 : index
    %442 = vector.load %arg10[%441, %c0_149, %c0_150] : memref<8x4x256xf32, #tpu.memory_space<vmem>>, vector<1x4x256xf32>
    %443 = vector.shape_cast %442 : vector<1x4x256xf32> to vector<4x256xf32>
    %cst_151 = arith.constant dense<0.000000e+00> : vector<8x256xf32>
    %444 = tpu.matmul %435, %434, %cst_151 {dimension_numbers = #tpu.dot_dimension_numbers<[1], [0], [0], [1], [0, 0, 1, 1], [], []>} : vector<8x32xf32>, vector<32x256xf32>, vector<8x256xf32> -> vector<8x256xf32>
    %445 = vector.extract_strided_slice %439 {offsets = [0, 0], sizes = [4, 128], strides = [1, 1]} : vector<4x256xf32> to vector<4x128xf32>
    %446 = vector.extract_strided_slice %444 {offsets = [0, 0], sizes = [4, 128], strides = [1, 1]} : vector<8x256xf32> to vector<4x128xf32>
    %447 = arith.addf %445, %446 : vector<4x128xf32>
    %448 = vector.extract_strided_slice %443 {offsets = [0, 128], sizes = [4, 128], strides = [1, 1]} : vector<4x256xf32> to vector<4x128xf32>
    %449 = vector.extract_strided_slice %444 {offsets = [4, 128], sizes = [4, 128], strides = [1, 1]} : vector<8x256xf32> to vector<4x128xf32>
    %450 = arith.addf %448, %449 : vector<4x128xf32>
    %451 = tpu.concatenate %447, %450 in 0 : vector<4x128xf32>, vector<4x128xf32> -> vector<8x128xf32>
    %452 = vector.extract_strided_slice %451 {offsets = [0, 0], sizes = [8, 32], strides = [1, 1]} : vector<8x128xf32> to vector<8x32xf32>
    %453 = arith.negf %452 : vector<8x32xf32>
    %454 = math.exp %453 : vector<8x32xf32>
    %cst_152 = arith.constant 1.000000e+00 : f32
    %455 = vector.broadcast %cst_152 : f32 to vector<8x32xf32>
    %456 = arith.addf %455, %454 : vector<8x32xf32>
    %457 = arith.divf %455, %456 : vector<8x32xf32>
    %458 = vector.extract_strided_slice %451 {offsets = [0, 32], sizes = [8, 32], strides = [1, 1]} : vector<8x128xf32> to vector<8x32xf32>
    %459 = arith.negf %458 : vector<8x32xf32>
    %460 = math.exp %459 : vector<8x32xf32>
    %cst_153 = arith.constant 1.000000e+00 : f32
    %461 = vector.broadcast %cst_153 : f32 to vector<8x32xf32>
    %462 = arith.addf %461, %460 : vector<8x32xf32>
    %463 = arith.divf %461, %462 : vector<8x32xf32>
    %464 = vector.extract_strided_slice %451 {offsets = [0, 64], sizes = [8, 32], strides = [1, 1]} : vector<8x128xf32> to vector<8x32xf32>
    %465 = math.tanh %464 : vector<8x32xf32>
    %466 = vector.extract_strided_slice %451 {offsets = [0, 96], sizes = [8, 32], strides = [1, 1]} : vector<8x128xf32> to vector<8x32xf32>
    %467 = arith.negf %466 : vector<8x32xf32>
    %468 = math.exp %467 : vector<8x32xf32>
    %cst_154 = arith.constant 1.000000e+00 : f32
    %469 = vector.broadcast %cst_154 : f32 to vector<8x32xf32>
    %470 = arith.addf %469, %468 : vector<8x32xf32>
    %471 = arith.divf %469, %470 : vector<8x32xf32>
    %472 = arith.mulf %463, %436 : vector<8x32xf32>
    %473 = arith.mulf %457, %465 : vector<8x32xf32>
    %474 = arith.addf %472, %473 : vector<8x32xf32>
    %475 = math.tanh %474 : vector<8x32xf32>
    %476 = arith.mulf %471, %475 : vector<8x32xf32>
    %c1_i32_155 = arith.constant 1 : i32
    %477 = arith.index_cast %c1_i32_155 : i32 to index
    %c0_156 = arith.constant 0 : index
    %c0_157 = arith.constant 0 : index
    %478 = vector.load %arg10[%477, %c0_156, %c0_157] : memref<8x4x256xf32, #tpu.memory_space<vmem>>, vector<1x4x256xf32>
    %479 = vector.shape_cast %478 : vector<1x4x256xf32> to vector<4x256xf32>
    %c7_i32_158 = arith.constant 7 : i32
    %480 = arith.subi %c7_i32_158, %c1_i32_155 : i32
    %481 = arith.index_cast %480 : i32 to index
    %c0_159 = arith.constant 0 : index
    %c0_160 = arith.constant 0 : index
    %482 = vector.load %arg10[%481, %c0_159, %c0_160] : memref<8x4x256xf32, #tpu.memory_space<vmem>>, vector<1x4x256xf32>
    %483 = vector.shape_cast %482 : vector<1x4x256xf32> to vector<4x256xf32>
    %cst_161 = arith.constant dense<0.000000e+00> : vector<8x256xf32>
    %484 = tpu.matmul %476, %434, %cst_161 {dimension_numbers = #tpu.dot_dimension_numbers<[1], [0], [0], [1], [0, 0, 1, 1], [], []>} : vector<8x32xf32>, vector<32x256xf32>, vector<8x256xf32> -> vector<8x256xf32>
    %485 = vector.extract_strided_slice %479 {offsets = [0, 0], sizes = [4, 128], strides = [1, 1]} : vector<4x256xf32> to vector<4x128xf32>
    %486 = vector.extract_strided_slice %484 {offsets = [0, 0], sizes = [4, 128], strides = [1, 1]} : vector<8x256xf32> to vector<4x128xf32>
    %487 = arith.addf %485, %486 : vector<4x128xf32>
    %488 = vector.extract_strided_slice %483 {offsets = [0, 128], sizes = [4, 128], strides = [1, 1]} : vector<4x256xf32> to vector<4x128xf32>
    %489 = vector.extract_strided_slice %484 {offsets = [4, 128], sizes = [4, 128], strides = [1, 1]} : vector<8x256xf32> to vector<4x128xf32>
    %490 = arith.addf %488, %489 : vector<4x128xf32>
    %491 = tpu.concatenate %487, %490 in 0 : vector<4x128xf32>, vector<4x128xf32> -> vector<8x128xf32>
    %492 = vector.extract_strided_slice %491 {offsets = [0, 0], sizes = [8, 32], strides = [1, 1]} : vector<8x128xf32> to vector<8x32xf32>
    %493 = arith.negf %492 : vector<8x32xf32>
    %494 = math.exp %493 : vector<8x32xf32>
    %cst_162 = arith.constant 1.000000e+00 : f32
    %495 = vector.broadcast %cst_162 : f32 to vector<8x32xf32>
    %496 = arith.addf %495, %494 : vector<8x32xf32>
    %497 = arith.divf %495, %496 : vector<8x32xf32>
    %498 = vector.extract_strided_slice %491 {offsets = [0, 32], sizes = [8, 32], strides = [1, 1]} : vector<8x128xf32> to vector<8x32xf32>
    %499 = arith.negf %498 : vector<8x32xf32>
    %500 = math.exp %499 : vector<8x32xf32>
    %cst_163 = arith.constant 1.000000e+00 : f32
    %501 = vector.broadcast %cst_163 : f32 to vector<8x32xf32>
    %502 = arith.addf %501, %500 : vector<8x32xf32>
    %503 = arith.divf %501, %502 : vector<8x32xf32>
    %504 = vector.extract_strided_slice %491 {offsets = [0, 64], sizes = [8, 32], strides = [1, 1]} : vector<8x128xf32> to vector<8x32xf32>
    %505 = math.tanh %504 : vector<8x32xf32>
    %506 = vector.extract_strided_slice %491 {offsets = [0, 96], sizes = [8, 32], strides = [1, 1]} : vector<8x128xf32> to vector<8x32xf32>
    %507 = arith.negf %506 : vector<8x32xf32>
    %508 = math.exp %507 : vector<8x32xf32>
    %cst_164 = arith.constant 1.000000e+00 : f32
    %509 = vector.broadcast %cst_164 : f32 to vector<8x32xf32>
    %510 = arith.addf %509, %508 : vector<8x32xf32>
    %511 = arith.divf %509, %510 : vector<8x32xf32>
    %512 = arith.mulf %503, %474 : vector<8x32xf32>
    %513 = arith.mulf %497, %505 : vector<8x32xf32>
    %514 = arith.addf %512, %513 : vector<8x32xf32>
    %515 = math.tanh %514 : vector<8x32xf32>
    %516 = arith.mulf %511, %515 : vector<8x32xf32>
    %c2_i32_165 = arith.constant 2 : i32
    %517 = arith.index_cast %c2_i32_165 : i32 to index
    %c0_166 = arith.constant 0 : index
    %c0_167 = arith.constant 0 : index
    %518 = vector.load %arg10[%517, %c0_166, %c0_167] : memref<8x4x256xf32, #tpu.memory_space<vmem>>, vector<1x4x256xf32>
    %519 = vector.shape_cast %518 : vector<1x4x256xf32> to vector<4x256xf32>
    %c7_i32_168 = arith.constant 7 : i32
    %520 = arith.subi %c7_i32_168, %c2_i32_165 : i32
    %521 = arith.index_cast %520 : i32 to index
    %c0_169 = arith.constant 0 : index
    %c0_170 = arith.constant 0 : index
    %522 = vector.load %arg10[%521, %c0_169, %c0_170] : memref<8x4x256xf32, #tpu.memory_space<vmem>>, vector<1x4x256xf32>
    %523 = vector.shape_cast %522 : vector<1x4x256xf32> to vector<4x256xf32>
    %cst_171 = arith.constant dense<0.000000e+00> : vector<8x256xf32>
    %524 = tpu.matmul %516, %434, %cst_171 {dimension_numbers = #tpu.dot_dimension_numbers<[1], [0], [0], [1], [0, 0, 1, 1], [], []>} : vector<8x32xf32>, vector<32x256xf32>, vector<8x256xf32> -> vector<8x256xf32>
    %525 = vector.extract_strided_slice %519 {offsets = [0, 0], sizes = [4, 128], strides = [1, 1]} : vector<4x256xf32> to vector<4x128xf32>
    %526 = vector.extract_strided_slice %524 {offsets = [0, 0], sizes = [4, 128], strides = [1, 1]} : vector<8x256xf32> to vector<4x128xf32>
    %527 = arith.addf %525, %526 : vector<4x128xf32>
    %528 = vector.extract_strided_slice %523 {offsets = [0, 128], sizes = [4, 128], strides = [1, 1]} : vector<4x256xf32> to vector<4x128xf32>
    %529 = vector.extract_strided_slice %524 {offsets = [4, 128], sizes = [4, 128], strides = [1, 1]} : vector<8x256xf32> to vector<4x128xf32>
    %530 = arith.addf %528, %529 : vector<4x128xf32>
    %531 = tpu.concatenate %527, %530 in 0 : vector<4x128xf32>, vector<4x128xf32> -> vector<8x128xf32>
    %532 = vector.extract_strided_slice %531 {offsets = [0, 0], sizes = [8, 32], strides = [1, 1]} : vector<8x128xf32> to vector<8x32xf32>
    %533 = arith.negf %532 : vector<8x32xf32>
    %534 = math.exp %533 : vector<8x32xf32>
    %cst_172 = arith.constant 1.000000e+00 : f32
    %535 = vector.broadcast %cst_172 : f32 to vector<8x32xf32>
    %536 = arith.addf %535, %534 : vector<8x32xf32>
    %537 = arith.divf %535, %536 : vector<8x32xf32>
    %538 = vector.extract_strided_slice %531 {offsets = [0, 32], sizes = [8, 32], strides = [1, 1]} : vector<8x128xf32> to vector<8x32xf32>
    %539 = arith.negf %538 : vector<8x32xf32>
    %540 = math.exp %539 : vector<8x32xf32>
    %cst_173 = arith.constant 1.000000e+00 : f32
    %541 = vector.broadcast %cst_173 : f32 to vector<8x32xf32>
    %542 = arith.addf %541, %540 : vector<8x32xf32>
    %543 = arith.divf %541, %542 : vector<8x32xf32>
    %544 = vector.extract_strided_slice %531 {offsets = [0, 64], sizes = [8, 32], strides = [1, 1]} : vector<8x128xf32> to vector<8x32xf32>
    %545 = math.tanh %544 : vector<8x32xf32>
    %546 = vector.extract_strided_slice %531 {offsets = [0, 96], sizes = [8, 32], strides = [1, 1]} : vector<8x128xf32> to vector<8x32xf32>
    %547 = arith.negf %546 : vector<8x32xf32>
    %548 = math.exp %547 : vector<8x32xf32>
    %cst_174 = arith.constant 1.000000e+00 : f32
    %549 = vector.broadcast %cst_174 : f32 to vector<8x32xf32>
    %550 = arith.addf %549, %548 : vector<8x32xf32>
    %551 = arith.divf %549, %550 : vector<8x32xf32>
    %552 = arith.mulf %543, %514 : vector<8x32xf32>
    %553 = arith.mulf %537, %545 : vector<8x32xf32>
    %554 = arith.addf %552, %553 : vector<8x32xf32>
    %555 = math.tanh %554 : vector<8x32xf32>
    %556 = arith.mulf %551, %555 : vector<8x32xf32>
    %c3_i32_175 = arith.constant 3 : i32
    %557 = arith.index_cast %c3_i32_175 : i32 to index
    %c0_176 = arith.constant 0 : index
    %c0_177 = arith.constant 0 : index
    %558 = vector.load %arg10[%557, %c0_176, %c0_177] : memref<8x4x256xf32, #tpu.memory_space<vmem>>, vector<1x4x256xf32>
    %559 = vector.shape_cast %558 : vector<1x4x256xf32> to vector<4x256xf32>
    %c7_i32_178 = arith.constant 7 : i32
    %560 = arith.subi %c7_i32_178, %c3_i32_175 : i32
    %561 = arith.index_cast %560 : i32 to index
    %c0_179 = arith.constant 0 : index
    %c0_180 = arith.constant 0 : index
    %562 = vector.load %arg10[%561, %c0_179, %c0_180] : memref<8x4x256xf32, #tpu.memory_space<vmem>>, vector<1x4x256xf32>
    %563 = vector.shape_cast %562 : vector<1x4x256xf32> to vector<4x256xf32>
    %cst_181 = arith.constant dense<0.000000e+00> : vector<8x256xf32>
    %564 = tpu.matmul %556, %434, %cst_181 {dimension_numbers = #tpu.dot_dimension_numbers<[1], [0], [0], [1], [0, 0, 1, 1], [], []>} : vector<8x32xf32>, vector<32x256xf32>, vector<8x256xf32> -> vector<8x256xf32>
    %565 = vector.extract_strided_slice %559 {offsets = [0, 0], sizes = [4, 128], strides = [1, 1]} : vector<4x256xf32> to vector<4x128xf32>
    %566 = vector.extract_strided_slice %564 {offsets = [0, 0], sizes = [4, 128], strides = [1, 1]} : vector<8x256xf32> to vector<4x128xf32>
    %567 = arith.addf %565, %566 : vector<4x128xf32>
    %568 = vector.extract_strided_slice %563 {offsets = [0, 128], sizes = [4, 128], strides = [1, 1]} : vector<4x256xf32> to vector<4x128xf32>
    %569 = vector.extract_strided_slice %564 {offsets = [4, 128], sizes = [4, 128], strides = [1, 1]} : vector<8x256xf32> to vector<4x128xf32>
    %570 = arith.addf %568, %569 : vector<4x128xf32>
    %571 = tpu.concatenate %567, %570 in 0 : vector<4x128xf32>, vector<4x128xf32> -> vector<8x128xf32>
    %572 = vector.extract_strided_slice %571 {offsets = [0, 0], sizes = [8, 32], strides = [1, 1]} : vector<8x128xf32> to vector<8x32xf32>
    %573 = arith.negf %572 : vector<8x32xf32>
    %574 = math.exp %573 : vector<8x32xf32>
    %cst_182 = arith.constant 1.000000e+00 : f32
    %575 = vector.broadcast %cst_182 : f32 to vector<8x32xf32>
    %576 = arith.addf %575, %574 : vector<8x32xf32>
    %577 = arith.divf %575, %576 : vector<8x32xf32>
    %578 = vector.extract_strided_slice %571 {offsets = [0, 32], sizes = [8, 32], strides = [1, 1]} : vector<8x128xf32> to vector<8x32xf32>
    %579 = arith.negf %578 : vector<8x32xf32>
    %580 = math.exp %579 : vector<8x32xf32>
    %cst_183 = arith.constant 1.000000e+00 : f32
    %581 = vector.broadcast %cst_183 : f32 to vector<8x32xf32>
    %582 = arith.addf %581, %580 : vector<8x32xf32>
    %583 = arith.divf %581, %582 : vector<8x32xf32>
    %584 = vector.extract_strided_slice %571 {offsets = [0, 64], sizes = [8, 32], strides = [1, 1]} : vector<8x128xf32> to vector<8x32xf32>
    %585 = math.tanh %584 : vector<8x32xf32>
    %586 = vector.extract_strided_slice %571 {offsets = [0, 96], sizes = [8, 32], strides = [1, 1]} : vector<8x128xf32> to vector<8x32xf32>
    %587 = arith.negf %586 : vector<8x32xf32>
    %588 = math.exp %587 : vector<8x32xf32>
    %cst_184 = arith.constant 1.000000e+00 : f32
    %589 = vector.broadcast %cst_184 : f32 to vector<8x32xf32>
    %590 = arith.addf %589, %588 : vector<8x32xf32>
    %591 = arith.divf %589, %590 : vector<8x32xf32>
    %592 = arith.mulf %583, %554 : vector<8x32xf32>
    %593 = arith.mulf %577, %585 : vector<8x32xf32>
    %594 = arith.addf %592, %593 : vector<8x32xf32>
    %595 = math.tanh %594 : vector<8x32xf32>
    %596 = arith.mulf %591, %595 : vector<8x32xf32>
    %c4_i32_185 = arith.constant 4 : i32
    %597 = arith.index_cast %c4_i32_185 : i32 to index
    %c0_186 = arith.constant 0 : index
    %c0_187 = arith.constant 0 : index
    %598 = vector.load %arg10[%597, %c0_186, %c0_187] : memref<8x4x256xf32, #tpu.memory_space<vmem>>, vector<1x4x256xf32>
    %599 = vector.shape_cast %598 : vector<1x4x256xf32> to vector<4x256xf32>
    %c7_i32_188 = arith.constant 7 : i32
    %600 = arith.subi %c7_i32_188, %c4_i32_185 : i32
    %601 = arith.index_cast %600 : i32 to index
    %c0_189 = arith.constant 0 : index
    %c0_190 = arith.constant 0 : index
    %602 = vector.load %arg10[%601, %c0_189, %c0_190] : memref<8x4x256xf32, #tpu.memory_space<vmem>>, vector<1x4x256xf32>
    %603 = vector.shape_cast %602 : vector<1x4x256xf32> to vector<4x256xf32>
    %cst_191 = arith.constant dense<0.000000e+00> : vector<8x256xf32>
    %604 = tpu.matmul %596, %434, %cst_191 {dimension_numbers = #tpu.dot_dimension_numbers<[1], [0], [0], [1], [0, 0, 1, 1], [], []>} : vector<8x32xf32>, vector<32x256xf32>, vector<8x256xf32> -> vector<8x256xf32>
    %605 = vector.extract_strided_slice %599 {offsets = [0, 0], sizes = [4, 128], strides = [1, 1]} : vector<4x256xf32> to vector<4x128xf32>
    %606 = vector.extract_strided_slice %604 {offsets = [0, 0], sizes = [4, 128], strides = [1, 1]} : vector<8x256xf32> to vector<4x128xf32>
    %607 = arith.addf %605, %606 : vector<4x128xf32>
    %608 = vector.extract_strided_slice %603 {offsets = [0, 128], sizes = [4, 128], strides = [1, 1]} : vector<4x256xf32> to vector<4x128xf32>
    %609 = vector.extract_strided_slice %604 {offsets = [4, 128], sizes = [4, 128], strides = [1, 1]} : vector<8x256xf32> to vector<4x128xf32>
    %610 = arith.addf %608, %609 : vector<4x128xf32>
    %611 = tpu.concatenate %607, %610 in 0 : vector<4x128xf32>, vector<4x128xf32> -> vector<8x128xf32>
    %612 = vector.extract_strided_slice %611 {offsets = [0, 0], sizes = [8, 32], strides = [1, 1]} : vector<8x128xf32> to vector<8x32xf32>
    %613 = arith.negf %612 : vector<8x32xf32>
    %614 = math.exp %613 : vector<8x32xf32>
    %cst_192 = arith.constant 1.000000e+00 : f32
    %615 = vector.broadcast %cst_192 : f32 to vector<8x32xf32>
    %616 = arith.addf %615, %614 : vector<8x32xf32>
    %617 = arith.divf %615, %616 : vector<8x32xf32>
    %618 = vector.extract_strided_slice %611 {offsets = [0, 32], sizes = [8, 32], strides = [1, 1]} : vector<8x128xf32> to vector<8x32xf32>
    %619 = arith.negf %618 : vector<8x32xf32>
    %620 = math.exp %619 : vector<8x32xf32>
    %cst_193 = arith.constant 1.000000e+00 : f32
    %621 = vector.broadcast %cst_193 : f32 to vector<8x32xf32>
    %622 = arith.addf %621, %620 : vector<8x32xf32>
    %623 = arith.divf %621, %622 : vector<8x32xf32>
    %624 = vector.extract_strided_slice %611 {offsets = [0, 64], sizes = [8, 32], strides = [1, 1]} : vector<8x128xf32> to vector<8x32xf32>
    %625 = math.tanh %624 : vector<8x32xf32>
    %626 = vector.extract_strided_slice %611 {offsets = [0, 96], sizes = [8, 32], strides = [1, 1]} : vector<8x128xf32> to vector<8x32xf32>
    %627 = arith.negf %626 : vector<8x32xf32>
    %628 = math.exp %627 : vector<8x32xf32>
    %cst_194 = arith.constant 1.000000e+00 : f32
    %629 = vector.broadcast %cst_194 : f32 to vector<8x32xf32>
    %630 = arith.addf %629, %628 : vector<8x32xf32>
    %631 = arith.divf %629, %630 : vector<8x32xf32>
    %632 = arith.mulf %623, %594 : vector<8x32xf32>
    %633 = arith.mulf %617, %625 : vector<8x32xf32>
    %634 = arith.addf %632, %633 : vector<8x32xf32>
    %635 = math.tanh %634 : vector<8x32xf32>
    %636 = arith.mulf %631, %635 : vector<8x32xf32>
    %c5_i32_195 = arith.constant 5 : i32
    %637 = arith.index_cast %c5_i32_195 : i32 to index
    %c0_196 = arith.constant 0 : index
    %c0_197 = arith.constant 0 : index
    %638 = vector.load %arg10[%637, %c0_196, %c0_197] : memref<8x4x256xf32, #tpu.memory_space<vmem>>, vector<1x4x256xf32>
    %639 = vector.shape_cast %638 : vector<1x4x256xf32> to vector<4x256xf32>
    %c7_i32_198 = arith.constant 7 : i32
    %640 = arith.subi %c7_i32_198, %c5_i32_195 : i32
    %641 = arith.index_cast %640 : i32 to index
    %c0_199 = arith.constant 0 : index
    %c0_200 = arith.constant 0 : index
    %642 = vector.load %arg10[%641, %c0_199, %c0_200] : memref<8x4x256xf32, #tpu.memory_space<vmem>>, vector<1x4x256xf32>
    %643 = vector.shape_cast %642 : vector<1x4x256xf32> to vector<4x256xf32>
    %cst_201 = arith.constant dense<0.000000e+00> : vector<8x256xf32>
    %644 = tpu.matmul %636, %434, %cst_201 {dimension_numbers = #tpu.dot_dimension_numbers<[1], [0], [0], [1], [0, 0, 1, 1], [], []>} : vector<8x32xf32>, vector<32x256xf32>, vector<8x256xf32> -> vector<8x256xf32>
    %645 = vector.extract_strided_slice %639 {offsets = [0, 0], sizes = [4, 128], strides = [1, 1]} : vector<4x256xf32> to vector<4x128xf32>
    %646 = vector.extract_strided_slice %644 {offsets = [0, 0], sizes = [4, 128], strides = [1, 1]} : vector<8x256xf32> to vector<4x128xf32>
    %647 = arith.addf %645, %646 : vector<4x128xf32>
    %648 = vector.extract_strided_slice %643 {offsets = [0, 128], sizes = [4, 128], strides = [1, 1]} : vector<4x256xf32> to vector<4x128xf32>
    %649 = vector.extract_strided_slice %644 {offsets = [4, 128], sizes = [4, 128], strides = [1, 1]} : vector<8x256xf32> to vector<4x128xf32>
    %650 = arith.addf %648, %649 : vector<4x128xf32>
    %651 = tpu.concatenate %647, %650 in 0 : vector<4x128xf32>, vector<4x128xf32> -> vector<8x128xf32>
    %652 = vector.extract_strided_slice %651 {offsets = [0, 0], sizes = [8, 32], strides = [1, 1]} : vector<8x128xf32> to vector<8x32xf32>
    %653 = arith.negf %652 : vector<8x32xf32>
    %654 = math.exp %653 : vector<8x32xf32>
    %cst_202 = arith.constant 1.000000e+00 : f32
    %655 = vector.broadcast %cst_202 : f32 to vector<8x32xf32>
    %656 = arith.addf %655, %654 : vector<8x32xf32>
    %657 = arith.divf %655, %656 : vector<8x32xf32>
    %658 = vector.extract_strided_slice %651 {offsets = [0, 32], sizes = [8, 32], strides = [1, 1]} : vector<8x128xf32> to vector<8x32xf32>
    %659 = arith.negf %658 : vector<8x32xf32>
    %660 = math.exp %659 : vector<8x32xf32>
    %cst_203 = arith.constant 1.000000e+00 : f32
    %661 = vector.broadcast %cst_203 : f32 to vector<8x32xf32>
    %662 = arith.addf %661, %660 : vector<8x32xf32>
    %663 = arith.divf %661, %662 : vector<8x32xf32>
    %664 = vector.extract_strided_slice %651 {offsets = [0, 64], sizes = [8, 32], strides = [1, 1]} : vector<8x128xf32> to vector<8x32xf32>
    %665 = math.tanh %664 : vector<8x32xf32>
    %666 = vector.extract_strided_slice %651 {offsets = [0, 96], sizes = [8, 32], strides = [1, 1]} : vector<8x128xf32> to vector<8x32xf32>
    %667 = arith.negf %666 : vector<8x32xf32>
    %668 = math.exp %667 : vector<8x32xf32>
    %cst_204 = arith.constant 1.000000e+00 : f32
    %669 = vector.broadcast %cst_204 : f32 to vector<8x32xf32>
    %670 = arith.addf %669, %668 : vector<8x32xf32>
    %671 = arith.divf %669, %670 : vector<8x32xf32>
    %672 = arith.mulf %663, %634 : vector<8x32xf32>
    %673 = arith.mulf %657, %665 : vector<8x32xf32>
    %674 = arith.addf %672, %673 : vector<8x32xf32>
    %675 = math.tanh %674 : vector<8x32xf32>
    %676 = arith.mulf %671, %675 : vector<8x32xf32>
    %c6_i32_205 = arith.constant 6 : i32
    %677 = arith.index_cast %c6_i32_205 : i32 to index
    %c0_206 = arith.constant 0 : index
    %c0_207 = arith.constant 0 : index
    %678 = vector.load %arg10[%677, %c0_206, %c0_207] : memref<8x4x256xf32, #tpu.memory_space<vmem>>, vector<1x4x256xf32>
    %679 = vector.shape_cast %678 : vector<1x4x256xf32> to vector<4x256xf32>
    %c7_i32_208 = arith.constant 7 : i32
    %680 = arith.subi %c7_i32_208, %c6_i32_205 : i32
    %681 = arith.index_cast %680 : i32 to index
    %c0_209 = arith.constant 0 : index
    %c0_210 = arith.constant 0 : index
    %682 = vector.load %arg10[%681, %c0_209, %c0_210] : memref<8x4x256xf32, #tpu.memory_space<vmem>>, vector<1x4x256xf32>
    %683 = vector.shape_cast %682 : vector<1x4x256xf32> to vector<4x256xf32>
    %cst_211 = arith.constant dense<0.000000e+00> : vector<8x256xf32>
    %684 = tpu.matmul %676, %434, %cst_211 {dimension_numbers = #tpu.dot_dimension_numbers<[1], [0], [0], [1], [0, 0, 1, 1], [], []>} : vector<8x32xf32>, vector<32x256xf32>, vector<8x256xf32> -> vector<8x256xf32>
    %685 = vector.extract_strided_slice %679 {offsets = [0, 0], sizes = [4, 128], strides = [1, 1]} : vector<4x256xf32> to vector<4x128xf32>
    %686 = vector.extract_strided_slice %684 {offsets = [0, 0], sizes = [4, 128], strides = [1, 1]} : vector<8x256xf32> to vector<4x128xf32>
    %687 = arith.addf %685, %686 : vector<4x128xf32>
    %688 = vector.extract_strided_slice %683 {offsets = [0, 128], sizes = [4, 128], strides = [1, 1]} : vector<4x256xf32> to vector<4x128xf32>
    %689 = vector.extract_strided_slice %684 {offsets = [4, 128], sizes = [4, 128], strides = [1, 1]} : vector<8x256xf32> to vector<4x128xf32>
    %690 = arith.addf %688, %689 : vector<4x128xf32>
    %691 = tpu.concatenate %687, %690 in 0 : vector<4x128xf32>, vector<4x128xf32> -> vector<8x128xf32>
    %692 = vector.extract_strided_slice %691 {offsets = [0, 0], sizes = [8, 32], strides = [1, 1]} : vector<8x128xf32> to vector<8x32xf32>
    %693 = arith.negf %692 : vector<8x32xf32>
    %694 = math.exp %693 : vector<8x32xf32>
    %cst_212 = arith.constant 1.000000e+00 : f32
    %695 = vector.broadcast %cst_212 : f32 to vector<8x32xf32>
    %696 = arith.addf %695, %694 : vector<8x32xf32>
    %697 = arith.divf %695, %696 : vector<8x32xf32>
    %698 = vector.extract_strided_slice %691 {offsets = [0, 32], sizes = [8, 32], strides = [1, 1]} : vector<8x128xf32> to vector<8x32xf32>
    %699 = arith.negf %698 : vector<8x32xf32>
    %700 = math.exp %699 : vector<8x32xf32>
    %cst_213 = arith.constant 1.000000e+00 : f32
    %701 = vector.broadcast %cst_213 : f32 to vector<8x32xf32>
    %702 = arith.addf %701, %700 : vector<8x32xf32>
    %703 = arith.divf %701, %702 : vector<8x32xf32>
    %704 = vector.extract_strided_slice %691 {offsets = [0, 64], sizes = [8, 32], strides = [1, 1]} : vector<8x128xf32> to vector<8x32xf32>
    %705 = math.tanh %704 : vector<8x32xf32>
    %706 = vector.extract_strided_slice %691 {offsets = [0, 96], sizes = [8, 32], strides = [1, 1]} : vector<8x128xf32> to vector<8x32xf32>
    %707 = arith.negf %706 : vector<8x32xf32>
    %708 = math.exp %707 : vector<8x32xf32>
    %cst_214 = arith.constant 1.000000e+00 : f32
    %709 = vector.broadcast %cst_214 : f32 to vector<8x32xf32>
    %710 = arith.addf %709, %708 : vector<8x32xf32>
    %711 = arith.divf %709, %710 : vector<8x32xf32>
    %712 = arith.mulf %703, %674 : vector<8x32xf32>
    %713 = arith.mulf %697, %705 : vector<8x32xf32>
    %714 = arith.addf %712, %713 : vector<8x32xf32>
    %715 = math.tanh %714 : vector<8x32xf32>
    %716 = arith.mulf %711, %715 : vector<8x32xf32>
    %c7_i32_215 = arith.constant 7 : i32
    %717 = arith.index_cast %c7_i32_215 : i32 to index
    %c0_216 = arith.constant 0 : index
    %c0_217 = arith.constant 0 : index
    %718 = vector.load %arg10[%717, %c0_216, %c0_217] : memref<8x4x256xf32, #tpu.memory_space<vmem>>, vector<1x4x256xf32>
    %719 = vector.shape_cast %718 : vector<1x4x256xf32> to vector<4x256xf32>
    %c7_i32_218 = arith.constant 7 : i32
    %720 = arith.subi %c7_i32_218, %c7_i32_215 : i32
    %721 = arith.index_cast %720 : i32 to index
    %c0_219 = arith.constant 0 : index
    %c0_220 = arith.constant 0 : index
    %722 = vector.load %arg10[%721, %c0_219, %c0_220] : memref<8x4x256xf32, #tpu.memory_space<vmem>>, vector<1x4x256xf32>
    %723 = vector.shape_cast %722 : vector<1x4x256xf32> to vector<4x256xf32>
    %cst_221 = arith.constant dense<0.000000e+00> : vector<8x256xf32>
    %724 = tpu.matmul %716, %434, %cst_221 {dimension_numbers = #tpu.dot_dimension_numbers<[1], [0], [0], [1], [0, 0, 1, 1], [], []>} : vector<8x32xf32>, vector<32x256xf32>, vector<8x256xf32> -> vector<8x256xf32>
    %725 = vector.extract_strided_slice %719 {offsets = [0, 0], sizes = [4, 128], strides = [1, 1]} : vector<4x256xf32> to vector<4x128xf32>
    %726 = vector.extract_strided_slice %724 {offsets = [0, 0], sizes = [4, 128], strides = [1, 1]} : vector<8x256xf32> to vector<4x128xf32>
    %727 = arith.addf %725, %726 : vector<4x128xf32>
    %728 = vector.extract_strided_slice %723 {offsets = [0, 128], sizes = [4, 128], strides = [1, 1]} : vector<4x256xf32> to vector<4x128xf32>
    %729 = vector.extract_strided_slice %724 {offsets = [4, 128], sizes = [4, 128], strides = [1, 1]} : vector<8x256xf32> to vector<4x128xf32>
    %730 = arith.addf %728, %729 : vector<4x128xf32>
    %731 = tpu.concatenate %727, %730 in 0 : vector<4x128xf32>, vector<4x128xf32> -> vector<8x128xf32>
    %732 = vector.extract_strided_slice %731 {offsets = [0, 0], sizes = [8, 32], strides = [1, 1]} : vector<8x128xf32> to vector<8x32xf32>
    %733 = arith.negf %732 : vector<8x32xf32>
    %734 = math.exp %733 : vector<8x32xf32>
    %cst_222 = arith.constant 1.000000e+00 : f32
    %735 = vector.broadcast %cst_222 : f32 to vector<8x32xf32>
    %736 = arith.addf %735, %734 : vector<8x32xf32>
    %737 = arith.divf %735, %736 : vector<8x32xf32>
    %738 = vector.extract_strided_slice %731 {offsets = [0, 32], sizes = [8, 32], strides = [1, 1]} : vector<8x128xf32> to vector<8x32xf32>
    %739 = arith.negf %738 : vector<8x32xf32>
    %740 = math.exp %739 : vector<8x32xf32>
    %cst_223 = arith.constant 1.000000e+00 : f32
    %741 = vector.broadcast %cst_223 : f32 to vector<8x32xf32>
    %742 = arith.addf %741, %740 : vector<8x32xf32>
    %743 = arith.divf %741, %742 : vector<8x32xf32>
    %744 = vector.extract_strided_slice %731 {offsets = [0, 64], sizes = [8, 32], strides = [1, 1]} : vector<8x128xf32> to vector<8x32xf32>
    %745 = math.tanh %744 : vector<8x32xf32>
    %746 = vector.extract_strided_slice %731 {offsets = [0, 96], sizes = [8, 32], strides = [1, 1]} : vector<8x128xf32> to vector<8x32xf32>
    %747 = arith.negf %746 : vector<8x32xf32>
    %748 = math.exp %747 : vector<8x32xf32>
    %cst_224 = arith.constant 1.000000e+00 : f32
    %749 = vector.broadcast %cst_224 : f32 to vector<8x32xf32>
    %750 = arith.addf %749, %748 : vector<8x32xf32>
    %751 = arith.divf %749, %750 : vector<8x32xf32>
    %752 = arith.mulf %743, %714 : vector<8x32xf32>
    %753 = arith.mulf %737, %745 : vector<8x32xf32>
    %754 = arith.addf %752, %753 : vector<8x32xf32>
    %755 = math.tanh %754 : vector<8x32xf32>
    %756 = arith.mulf %751, %755 : vector<8x32xf32>
    %c8_i32_225 = arith.constant 8 : i32
    %757 = vector.extract_strided_slice %756 {offsets = [0, 0], sizes = [4, 32], strides = [1, 1]} : vector<8x32xf32> to vector<4x32xf32>
    %c0_226 = arith.constant 0 : index
    %c0_227 = arith.constant 0 : index
    %758 = vector.load %arg7[%c0_226, %c0_227] : memref<64x2xf32, #tpu.memory_space<vmem>>, vector<32x2xf32>
    %cst_228 = arith.constant dense<0.000000e+00> : vector<4x2xf32>
    %759 = tpu.matmul %757, %758, %cst_228 {dimension_numbers = #tpu.dot_dimension_numbers<[1], [0], [0], [1], [0, 0, 1, 1], [], []>} : vector<4x32xf32>, vector<32x2xf32>, vector<4x2xf32> -> vector<4x2xf32>
    %760 = vector.extract_strided_slice %756 {offsets = [4, 0], sizes = [4, 32], strides = [1, 1]} : vector<8x32xf32> to vector<4x32xf32>
    %c32_229 = arith.constant 32 : index
    %c0_230 = arith.constant 0 : index
    %761 = vector.load %arg7[%c32_229, %c0_230] : memref<64x2xf32, #tpu.memory_space<vmem>>, vector<32x2xf32>
    %cst_231 = arith.constant dense<0.000000e+00> : vector<4x2xf32>
    %762 = tpu.matmul %760, %761, %cst_231 {dimension_numbers = #tpu.dot_dimension_numbers<[1], [0], [0], [1], [0, 0, 1, 1], [], []>} : vector<4x32xf32>, vector<32x2xf32>, vector<4x2xf32> -> vector<4x2xf32>
    %763 = arith.addf %759, %762 : vector<4x2xf32>
    %c0_232 = arith.constant 0 : index
    %c0_233 = arith.constant 0 : index
    %764 = vector.load %arg8[%c0_232, %c0_233] : memref<1x2xf32, #tpu.memory_space<vmem>>, vector<1x2xf32>
    %765 = vector.broadcast %764 : vector<1x2xf32> to vector<4x2xf32>
    %766 = arith.addf %763, %765 : vector<4x2xf32>
    %c0_234 = arith.constant 0 : index
    %c0_235 = arith.constant 0 : index
    %767 = vector.load %arg9[%c0_234, %c0_235] : memref<4x2xf32, #tpu.memory_space<vmem>>, vector<4x2xf32>
    tpu.vector_store %arg9[%c0_234, %c0_235], %766 {strides = array<i32>} : memref<4x2xf32, #tpu.memory_space<vmem>>, vector<4x2xf32>,
    return
  }
}

</mosaic_0001>

<bundles_post_ra>
// kernel: tpu_custom_call.1
= control target key start
LH: loop header
LB: loop body
LE: loop exit
PB: predicated region body
PF: predicated region fallthrough
CT: control target
= control target key end

     0   :  { %14 = vsyncpa [#allocation6], 0  ;;  %s3606_s0 = inlined_call_operand.hbm [shape: f32[8,4,32], index: 0, kind: input, shape index: {}]   ;;  %s3607_s1 = inlined_call_operand.vmem [shape: f32[32,256], index: 1, kind: input, shape index: {}]   ;;  %s3608_s2 = inlined_call_operand.hbm [shape: f32[32,256], index: 2, kind: input, shape index: {}]   ;;  %s3609_s3 = inlined_call_operand.vmem [shape: f32[1,256], index: 3, kind: input, shape index: {}]   ;;  %s3610_s4 = inlined_call_operand.hbm [shape: f32[64,256], index: 4, kind: input, shape index: {}]   ;;  %s3611_s5 = inlined_call_operand.hbm [shape: f32[32,256], index: 5, kind: input, shape index: {}]   ;;  %s3612_s6 = inlined_call_operand.vmem [shape: f32[1,256], index: 6, kind: input, shape index: {}]   ;;  %s3613_s7 = inlined_call_operand.vmem [shape: f32[64,2], index: 7, kind: input, shape index: {}]   ;;  %s3614_s8 = inlined_call_operand.vmem [shape: f32[1,2], index: 8, kind: input, shape index: {}]   ;;  %s3615_s9 = inlined_call_operand.vmem [shape: f32[4,2], index: 9, kind: output, shape index: {}]  }
   0x1   :  { %15 = vsyncpa [#allocation8], 0 }
   0x2   :  { %16 = vsyncpa [#allocation11], 0  ;;  %s3105_s30 = smov [#allocation7]   ;;  %s3011_s13 = scalar_lea.hbm %s3608_s2, 1024 }
   0x3   :  { %s36_s10 = sshll.u32 %s3105_s30, 4  ;;  %p3012_p0 = scmp.ne.s32.totalorder %s3608_s2, %s3011_s13  ;;  %s37_s10 = int_to_ptr.vmem [resolvable:$true] %s36_s10 }
   0x4   :  { %p3015_p1 = scmp.lt.u32.totalorder %s3011_s13, %s3608_s2 }
   0x6   :  { %p3017_p2 = pnand %p3015_p1, %p3012_p0 }
   0x8   :  { %3020 = shalt.err (!%p3017_p2)
}
   0x9   :  { %s3021_s18 = scalar_lea.vmem %s37_s10, 1024  ;;  %p3026_p4 = scmp.lt.s32.totalorder %s37_s10, %s37_s10 }
   0xa   :  { %p3022_p3 = scmp.ne.s32.totalorder %s37_s10, %s3021_s18  ;;  %p3027_p5 = scmp.lt.s32.totalorder %s3021_s18, %s3021_s18 }
   0xc   :  { %p3028_p6 = por %p3027_p5, %p3026_p4 }
   0xe   :  { %p3029_p7 = pnand %p3028_p6, %p3022_p3 }
  0x10   :  { %3032 = shalt.err (!%p3029_p7)
}
  0x11   :  { %s3106_s19 = smov 256   ;;  %s3107_s20 = smov 16  }
  0x12   :  { %42 = dma.hbm_to_vmem [thread:$0]  %s3608_s2, 1024, %s37_s10, [#allocation8], %s3106_s19, %s3106_s19, %s3107_s20  }
  0x13   :  { %s3108_s23 = smov [#allocation5]   ;;  %s3033_s27 = scalar_lea.hbm %s3606_s0, 512 }
  0x14   :  { %s22_s24 = sshll.u32 %s3108_s23, 4  ;;  %p3034_p8 = scmp.ne.s32.totalorder %s3606_s0, %s3033_s27  ;;  %s23_s24 = int_to_ptr.vmem [resolvable:$true] %s22_s24 }
  0x15   :  { %p3037_p9 = scmp.lt.u32.totalorder %s3033_s27, %s3606_s0 }
  0x17   :  { %p3039_p10 = pnand %p3037_p9, %p3034_p8 }
  0x19   :  { %3042 = shalt.err (!%p3039_p10)
}
  0x1a   :  { %s3043_s12 = scalar_lea.vmem %s23_s24, 512  ;;  %p3048_p12 = scmp.lt.s32.totalorder %s23_s24, %s23_s24 }
  0x1b   :  { %p3044_p11 = scmp.ne.s32.totalorder %s23_s24, %s3043_s12  ;;  %p3049_p13 = scmp.lt.s32.totalorder %s3043_s12, %s3043_s12 }
  0x1d   :  { %p3050_p0 = por %p3049_p13, %p3048_p12 }
  0x1f   :  { %p3051_p1 = pnand %p3050_p0, %p3044_p11 }
  0x21   :  { %3054 = shalt.err (!%p3051_p1)
}
  0x22   :  { %s3109_s2 = smov 64   ;;  %s3110_s10 = smov 4  }
  0x23   :  { %28 = dma.hbm_to_vmem [thread:$0]  %s3606_s0, 512, %s23_s24, [#allocation6], %s3109_s2, %s3109_s2, %s3110_s10  }
  0x24   :  { %s3111_s15 = smov [#allocation9]   ;;  %s3112_s17 = smov [#allocation10]  }
  0x25   :  { %s50_s16 = sshll.u32 %s3111_s15, 4  ;;  %s62_s18 = sshll.u32 %s3112_s17, 4  ;;  %s51_s16 = int_to_ptr.vmem [resolvable:$true] %s50_s16  ;;  %s3196_s18 = int_to_ptr.vmem [resolvable:$true] %s62_s18 }
  0x26   :  { %s3055_s23 = scalar_lea.hbm %s3610_s4, 2048 }
  0x27   :  { %p3056_p2 = scmp.ne.s32.totalorder %s3610_s4, %s3055_s23  ;;  %p3059_p3 = scmp.lt.u32.totalorder %s3055_s23, %s3610_s4 }
  0x29   :  { %p3061_p4 = pnand %p3059_p3, %p3056_p2 }
  0x2b   :  { %3064 = shalt.err (!%p3061_p4)
}
  0x2c   :  { %s3065_s0 = scalar_lea.vmem %s51_s16, 2048  ;;  %p3070_p6 = scmp.lt.s32.totalorder %s51_s16, %s51_s16 }
  0x2d   :  { %p3066_p5 = scmp.ne.s32.totalorder %s51_s16, %s3065_s0  ;;  %p3071_p7 = scmp.lt.s32.totalorder %s3065_s0, %s3065_s0 }
  0x2f   :  { %p3072_p8 = por %p3071_p7, %p3070_p6 }
  0x31   :  { %p3073_p9 = pnand %p3072_p8, %p3066_p5 }
  0x33   :  { %3076 = shalt.err (!%p3073_p9)
}
  0x34   :  { %56 = dma.hbm_to_vmem [thread:$0]  %s3610_s4, 2048, %s51_s16, [#allocation8], %s3106_s19, %s3106_s19, %s3107_s20  }
  0x35   :  { %s3077_s12 = scalar_lea.hbm %s3611_s5, 1024 }
  0x36   :  { %p3078_p10 = scmp.ne.s32.totalorder %s3611_s5, %s3077_s12  ;;  %p3081_p11 = scmp.lt.u32.totalorder %s3077_s12, %s3611_s5 }
  0x38   :  { %p3083_p12 = pnand %p3081_p11, %p3078_p10 }
  0x3a   :  { %3086 = shalt.err (!%p3083_p12)
}
  0x3b   :  { %s3087_s17 = scalar_lea.vmem %s3196_s18, 1024  ;;  %p3092_p0 = scmp.lt.s32.totalorder %s3196_s18, %s3196_s18 }
  0x3c   :  { %p3088_p13 = scmp.ne.s32.totalorder %s3196_s18, %s3087_s17  ;;  %p3093_p1 = scmp.lt.s32.totalorder %s3087_s17, %s3087_s17 }
  0x3e   :  { %p3094_p2 = por %p3093_p1, %p3092_p0 }
  0x40   :  { %p3095_p3 = pnand %p3094_p2, %p3088_p13 }
  0x42   :  { %3098 = shalt.err (!%p3095_p3)
}
  0x43   :  { %68 = dma.hbm_to_vmem [thread:$0]  %s3611_s5, 1024, %s3196_s18, [#allocation11], %s3106_s19, %s3106_s19, %s3107_s20  }
  0x44   :  { %3099 = dma.done.wait [#allocation6], 512  }
  0x45   :  { %3100 = vsyncadd [#allocation6], 4294966784 }
  0x46   :  { %3101 = dma.done.wait [#allocation8], 3072  }
  0x47   :  { %3102 = vsyncadd [#allocation8], 4294964224 }
  0x48   :  { %3103 = dma.done.wait [#allocation11], 1024  }
  0x49   :  { %3104 = vsyncadd [#allocation11], 4294966272  ;;  %v3113_v0 = vmov 0.0   ;;  %v96_v1 = vld [vmem:[%s3607_s1 + $0x8] sm:$0xff]  ;;  %v98_v2 = vld [vmem:[%s3607_s1 + $0x18] sm:$0xff]  ;;  %vm127_vm0 = vcmask 261120   ;;  %v105_v29 = vlaneseq }
  0x4a   :  { %200 = vmatprep.mubr.f32.mxu0 %v3113_v0  ;;  %335 = vmatprep.mubr.f32.mxu1 %v3113_v0  ;;  %v95_v3 = vld [vmem:[%s3607_s1] sm:$0xff]  ;;  %v2687_v4 = vpack.c.bf16 %v98_v2, %v96_v1  ;;  %v97_v5 = vld [vmem:[%s3607_s1 + $0x10] sm:$0xff]  ;;  %v100_v6 = vld [vmem:[%s3607_s1 + $0x28] sm:$0xff]  ;;  %vm353_vm1 = vcmask 1043456   ;;  %vm383_vm2 = vcmask 257024   ;;  %vm386_vm3 = vcmask 261124  }
  0x4b   :  { %v102_v7 = vld [vmem:[%s3607_s1 + $0x38] sm:$0xff]  ;;  %v2689_v8 = vpack.c.bf16 %v97_v5, %v95_v3  ;;  %v99_v10 = vld [vmem:[%s3607_s1 + $0x20] sm:$0xff]  ;;  %v101_v11 = vld [vmem:[%s3607_s1 + $0x30] sm:$0xff]  ;;  %v3291_v30 = vshrl.u32 %v105_v29, 7  ;;  %vm3116_vm4 = vmmov 0   ;;  %vm2601_vm5 = vcmask 11264  }
  0x4c   :  { %v2691_v9 = vpack.c.bf16 %v102_v7, %v100_v6  ;;  %v258_v12 = vld [vmem:[#allocation7 + $0x8] sm:$0xff]  ;;  %2688 = vmatprep.subr.bf16.mxu0 %v2687_v4  ;;  %v260_v13 = vld [vmem:[#allocation7 + $0x18] sm:$0xff]  ;;  %v257_v14 = vld [vmem:[#allocation7] sm:$0xff]  ;;  %v2693_v16 = vpack.c.bf16 %v101_v11, %v99_v10 }
  0x4d   :  { %v259_v15 = vld [vmem:[#allocation7 + $0x10] sm:$0xff]  ;;  %2690 = vmatpush1.bf16.msra.mxu0 %v2689_v8  ;;  %v3259_v17 = vpack.c.bf16 %v260_v13, %v258_v12  ;;  %v262_v19 = vld [vmem:[#allocation7 + $0x28] sm:$0xff]  ;;  %v264_v20 = vld [vmem:[#allocation7 + $0x38] sm:$0xff]  ;;  %v107_v31 = vsub.s32 0, %v3291_v30  ;;  %v111_v33 = vsub.s32 1, %v3291_v30 }
  0x4e   :  { %v3261_v18 = vpack.c.bf16 %v259_v15, %v257_v14  ;;  %2692 = vmatprep.subr.bf16.mxu0 %v2691_v9  ;;  %v261_v21 = vld [vmem:[#allocation7 + $0x20] sm:$0xff]  ;;  %v3264_v22 = vpack.c.bf16 %v264_v20, %v262_v19  ;;  %v263_v23 = vld [vmem:[#allocation7 + $0x30] sm:$0xff]  ;;  %v2872_v26 = vld [vmem:[#allocation5 + $0x8] sm:$0xff]  }
  0x4f   :  { %2696 = vmatprep.subr.bf16.mxu1 %v3259_v17  ;;  %v2871_v24 = vld [vmem:[#allocation5] sm:$0xff]   ;;  %v3267_v25 = vpack.c.bf16 %v263_v23, %v261_v21  ;;  %v2873_v27 = vld [vmem:[#allocation5 + $0x10] sm:$0xff]   ;;  %v2874_v28 = vld [vmem:[#allocation5 + $0x18] sm:$0xff]  }
  0x50   :  { %2698 = vmatpush1.bf16.msra.mxu1 %v3261_v18  ;;  %v103_v32 = vld [vmem:[%s3609_s3] sm:$0x3]  ;;  %s3114_s3 = smov 32  }
  0x51   :  { %2694 = vmatpush1.bf16.msra.mxu0 %v2693_v16  ;;  %2700 = vmatprep.subr.bf16.mxu1 %v3264_v22  ;;  %v108_v34 = vrot.slane %v103_v32, %v107_v31  ;;  %v112_v35 = vrot.slane %v103_v32, %v111_v33 }
  0x52   :  { %2712 = vmatprep.subr.bf16.mxu0 %v3259_v17 }
  0x54   :  { %2610 = vmatmul.mubr.msk.f32.vlgmr.msra.gmra.mrb[0].mxu0 %vm127_vm0, %v2871_v24  ;;  %2702 = vmatpush1.bf16.msra.mxu1 %v3267_v25 }
  0x55   :  { %206 = vmatprep.mubr.f32.mxu0 %v3113_v0  ;;  %2704 = vmatprep.subr.bf16.mxu1 %v3259_v17 }
  0x56   :  { %2714 = vmatpush1.bf16.msra.mxu0 %v3261_v18 }
  0x57   :  { %336 = vmatmul.mubr.f32.vlgmr.msra.gmra.mrb[0].mxu1 %v3113_v0  ;;  %2716 = vmatprep.subr.bf16.mxu0 %v3264_v22 }
  0x58   :  { %2611 = vmatmul.mubr.msk.f32.gmra.mrb[2].mxu0 %vm127_vm0, %v2872_v26  ;;  %2706 = vmatpush1.bf16.msra.mxu1 %v3261_v18 }
  0x59   :  { %212 = vmatprep.mubr.f32.mxu0 %v3113_v0  ;;  %2708 = vmatprep.subr.bf16.mxu1 %v3264_v22 }
  0x5a   :  { %458 = vmatprep.mubr.f32.mxu1 %v3113_v0  ;;  %2718 = vmatpush1.bf16.msra.mxu0 %v3267_v25 }
  0x5b   :  { %2728 = vmatprep.subr.bf16.mxu0 %v3259_v17 }
  0x5c   :  { %2612 = vmatmul.mubr.msk.f32.gmra.mrb[4].mxu0 %vm127_vm0, %v2873_v27  ;;  %2710 = vmatpush1.bf16.msra.mxu1 %v3267_v25 }
  0x5d   :  { %218 = vmatprep.mubr.f32.mxu0 %v3113_v0  ;;  %2720 = vmatprep.subr.bf16.mxu1 %v3259_v17 }
  0x60   :  { %2613 = vmatmul.mubr.msk.f32.gmra.mrb[6].mxu0 %vm127_vm0, %v2874_v28 }
  0x61   :  { %579 = vmatprep.mubr.f32.mxu0 %v3113_v0 }
 0x127   :  { %v202_v36 = vpop.f32.mrb[0].mxu0 }
 0x128   :  { %v203_v37 = vadd.f32 %v202_v36, %v108_v34  ;;  %v204_v38 = vpop.f32.mrb[1].mxu0 }
 0x129   :  { %v205_v39 = vadd.f32 %v204_v38, %v112_v35 }
 0x12a   :  { %v337_v40 = vpop.f32.mrb[0].mxu1 }
 0x12b   :  { %v208_v41 = vpop.f32.mrb[2].mxu0  ;;  %v3302_v42 = vcombine.low %v203_v37, %v205_v39  ;;  %v339_v43 = vpop.f32.mrb[1].mxu1  ;;  %v3304_v44 = vcombine.high %v203_v37, %v205_v39 }
 0x12c   :  { %v209_v45 = vadd.f32 %v208_v41, %v108_v34  ;;  %v210_v46 = vpop.f32.mrb[3].mxu0  ;;  %v347_v63 = vcombine.high %v339_v43, %v339_v43 }
 0x12d   :  { %v211_v47 = vadd.f32 %v210_v46, %v112_v35  ;;  %v342_v48 = vadd.f32 %v337_v40, %v3302_v42 }
 0x12f   :  { %v214_v49 = vpop.f32.mrb[4].mxu0  ;;  %v3307_v50 = vcombine.low %v209_v45, %v211_v47  ;;  %v3309_v51 = vcombine.high %v209_v45, %v211_v47 }
 0x130   :  { %v215_v52 = vadd.f32 %v214_v49, %v108_v34  ;;  %v216_v53 = vpop.f32.mrb[5].mxu0 }
 0x131   :  { %v217_v54 = vadd.f32 %v216_v53, %v112_v35 }
 0x133   :  { %v3311_v55 = vcombine.low %v215_v52, %v217_v54  ;;  %v3313_v56 = vcombine.high %v215_v52, %v217_v54  ;;  %v220_v57 = vpop.f32.mrb[6].mxu0 }
 0x134   :  { %v221_v58 = vadd.f32 %v220_v57, %v108_v34  ;;  %v222_v59 = vpop.f32.mrb[7].mxu0 }
 0x135   :  { %v223_v60 = vadd.f32 %v222_v59, %v112_v35  ;;  %v588_v54 = vrot.slane %v3313_v56, 4 }
 0x137   :  { %v3315_v61 = vcombine.low %v221_v58, %v223_v60  ;;  %v3317_v62 = vcombine.high %v221_v58, %v223_v60 }
 0x139   :  { %v344_v1 = vrot.slane %v3317_v62, 4  ;;  %v467_v24 = vrot.slane %v3315_v61, 4 }
 0x13b   :  { %v349_v2 = vadd.f32 %v347_v63, %v344_v1 }
 0x13d   :  { %v351_v3 = vcombine.low %v349_v2, %v349_v2 }
 0x13f   :  { %v354_v4 = vsel %vm353_vm1, %v342_v48, %v351_v3 }
 0x140   :  { %2883 = vtanh.f32 %v354_v4  ;;  %v2614_v6 = vmul.f32 -1.442695, %v354_v4 }
 0x142   :  { %2885 = vpow2.f32 %v2614_v6 }
 0x14a   :  { %v2884_v5 = vpop.eup %2883 }
 0x14b   :  { %364 = vrot.lane.b32.xlu0 %v2884_v5, %s3109_s2 }
 0x14c   :  { %v2886_v7 = vpop.eup %2885 }
 0x14d   :  { %v358_v8 = vadd.f32 1.0, %v2886_v7 }
 0x14f   :  { %2887 = vrcp.f32 %v358_v8 }
 0x159   :  { %v2888_v9 = vpop.eup %2887 }
 0x15a   :  { %v362_v12 = vmul.f32 0.0, %v2888_v9 }
 0x1bd   :  { %v365_v10 = vpop.permute.xlu0 %364 }
 0x1be   :  { %v367_v11 = vmul.f32 %v2888_v9, %v365_v10 }
 0x1c0   :  { %369 = vrot.lane.b32.xlu0 %v367_v11, %s3114_s3 }
 0x232   :  { %v370_v13 = vpop.permute.xlu0 %369 }
 0x233   :  { %v372_v14 = vadd.f32 %v370_v13, %v362_v12 }
 0x235   :  { %2889 = vtanh.f32 %v372_v14 }
 0x23f   :  { %v2890_v15 = vpop.eup %2889 }
 0x240   :  { %375 = vrot.lane.b32.xlu1 %v2890_v15, %s3109_s2 }
 0x2b2   :  { %v376_v16 = vpop.permute.xlu1 %375 }
 0x2b3   :  { %v378_v19 = vmul.f32 %v2888_v9, %v376_v16 }
 0x2b5   :  { %380 = vrot.lane.b32.xlu1 %v378_v19, %s3114_s3  ;;  %v709_v19 = vrot.slane %v3311_v55, 4 }
 0x327   :  { %v381_v20 = vpop.permute.xlu1 %380 }
 0x328   :  { %384 = vst.msk [vmem:[#allocation3] sm:$0xf] %vm383_vm2, %v381_v20  ;;  %2615 = vmatmul.mubr.msk.f32.vlgmr.msra.gmra.mrb[2].mxu1 %vm127_vm0, %v381_v20 }
 0x329   :  { %387 = vst.msk [vmem:[#allocation4 + $0x18] sm:$0xf0] %vm386_vm3, %v381_v20  ;;  %2722 = vmatpush1.bf16.msra.mxu1 %v3261_v18  ;;  %700 = vmatprep.mubr.f32.mxu1 %v3113_v0 }
 0x32a   :  { %2724 = vmatprep.subr.bf16.mxu1 %v3264_v22 }
 0x32d   :  { %2726 = vmatpush1.bf16.msra.mxu1 %v3267_v25 }
 0x32e   :  { %2736 = vmatprep.subr.bf16.mxu1 %v3259_v17 }
 0x3fb   :  { %v460_v21 = vpop.f32.mrb[2].mxu1 }
 0x3fc   :  { %v462_v23 = vpop.f32.mrb[3].mxu1  ;;  %v465_v28 = vadd.f32 %v460_v21, %v3304_v44 }
 0x3fd   :  { %v470_v26 = vcombine.high %v462_v23, %v462_v23 }
 0x3ff   :  { %v472_v27 = vadd.f32 %v470_v26, %v467_v24 }
 0x401   :  { %v474_v29 = vcombine.low %v472_v27, %v472_v27 }
 0x403   :  { %v476_v32 = vsel %vm353_vm1, %v465_v28, %v474_v29 }
 0x404   :  { %2891 = vtanh.f32 %v476_v32  ;;  %v2616_v35 = vmul.f32 -1.442695, %v476_v32 }
 0x406   :  { %2893 = vpow2.f32 %v2616_v35 }
 0x40e   :  { %v2892_v34 = vpop.eup %2891 }
 0x40f   :  { %486 = vrot.lane.b32.xlu0 %v2892_v34, %s3109_s2 }
 0x410   :  { %v2894_v36 = vpop.eup %2893 }
 0x411   :  { %v480_v37 = vadd.f32 1.0, %v2894_v36 }
 0x413   :  { %2895 = vrcp.f32 %v480_v37 }
 0x41d   :  { %v2896_v38 = vpop.eup %2895 }
 0x41e   :  { %v484_v41 = vmul.f32 %v2896_v38, %v372_v14 }
 0x481   :  { %v487_v39 = vpop.permute.xlu0 %486 }
 0x482   :  { %v489_v40 = vmul.f32 %v2896_v38, %v487_v39 }
 0x484   :  { %491 = vrot.lane.b32.xlu1 %v489_v40, %s3114_s3 }
 0x4f6   :  { %v492_v43 = vpop.permute.xlu1 %491 }
 0x4f7   :  { %v494_v45 = vadd.f32 %v492_v43, %v484_v41 }
 0x4f9   :  { %2897 = vtanh.f32 %v494_v45 }
 0x503   :  { %v2898_v46 = vpop.eup %2897 }
 0x504   :  { %497 = vrot.lane.b32.xlu0 %v2898_v46, %s3109_s2 }
 0x576   :  { %v498_v47 = vpop.permute.xlu0 %497 }
 0x577   :  { %v500_v48 = vmul.f32 %v2896_v38, %v498_v47  ;;  %v828_v47 = vrot.slane %v3309_v51, 4 }
 0x579   :  { %502 = vrot.lane.b32.xlu1 %v500_v48, %s3114_s3 }
 0x5eb   :  { %v503_v49 = vpop.permute.xlu1 %502 }
 0x5ec   :  { %506 = vst.msk [vmem:[#allocation3 + $0x4] sm:$0xf] %vm383_vm2, %v503_v49  ;;  %2617 = vmatmul.mubr.msk.f32.vlgmr.msra.gmra.mrb[8].mxu0 %vm127_vm0, %v503_v49 }
 0x5ed   :  { %508 = vst.msk [vmem:[#allocation4 + $0x14] sm:$0xf0] %vm386_vm3, %v503_v49  ;;  %2730 = vmatpush1.bf16.msra.mxu0 %v3261_v18  ;;  %819 = vmatprep.mubr.f32.mxu0 %v3113_v0 }
 0x5ee   :  { %2732 = vmatprep.subr.bf16.mxu0 %v3264_v22 }
 0x5f1   :  { %2734 = vmatpush1.bf16.msra.mxu0 %v3267_v25 }
 0x5f2   :  { %2744 = vmatprep.subr.bf16.mxu0 %v3259_v17 }
 0x6bf   :  { %v581_v52 = vpop.f32.mrb[8].mxu0 }
 0x6c0   :  { %v583_v53 = vpop.f32.mrb[9].mxu0  ;;  %v586_v59 = vadd.f32 %v581_v52, %v3307_v50 }
 0x6c1   :  { %v591_v57 = vcombine.high %v583_v53, %v583_v53 }
 0x6c3   :  { %v593_v58 = vadd.f32 %v591_v57, %v588_v54 }
 0x6c5   :  { %v595_v60 = vcombine.low %v593_v58, %v593_v58 }
 0x6c7   :  { %v597_v63 = vsel %vm353_vm1, %v586_v59, %v595_v60 }
 0x6c8   :  { %2899 = vtanh.f32 %v597_v63  ;;  %v2618_v2 = vmul.f32 -1.442695, %v597_v63 }
 0x6ca   :  { %2901 = vpow2.f32 %v2618_v2 }
 0x6d2   :  { %v2900_v1 = vpop.eup %2899 }
 0x6d3   :  { %607 = vrot.lane.b32.xlu0 %v2900_v1, %s3109_s2 }
 0x6d4   :  { %v2902_v3 = vpop.eup %2901 }
 0x6d5   :  { %v601_v4 = vadd.f32 1.0, %v2902_v3 }
 0x6d7   :  { %2903 = vrcp.f32 %v601_v4 }
 0x6e1   :  { %v2904_v5 = vpop.eup %2903 }
 0x6e2   :  { %v605_v8 = vmul.f32 %v2904_v5, %v494_v45 }
 0x745   :  { %v608_v6 = vpop.permute.xlu0 %607 }
 0x746   :  { %v610_v7 = vmul.f32 %v2904_v5, %v608_v6 }
 0x748   :  { %612 = vrot.lane.b32.xlu1 %v610_v7, %s3114_s3 }
 0x7ba   :  { %v613_v9 = vpop.permute.xlu1 %612 }
 0x7bb   :  { %v615_v10 = vadd.f32 %v613_v9, %v605_v8 }
 0x7bd   :  { %2905 = vtanh.f32 %v615_v10 }
 0x7c7   :  { %v2906_v11 = vpop.eup %2905 }
 0x7c8   :  { %618 = vrot.lane.b32.xlu0 %v2906_v11, %s3109_s2 }
 0x83a   :  { %v619_v12 = vpop.permute.xlu0 %618 }
 0x83b   :  { %v621_v13 = vmul.f32 %v2904_v5, %v619_v12 }
 0x83d   :  { %623 = vrot.lane.b32.xlu1 %v621_v13, %s3114_s3 }
 0x8af   :  { %v624_v14 = vpop.permute.xlu1 %623 }
 0x8b0   :  { %627 = vst.msk [vmem:[#allocation3 + $0x8] sm:$0xf] %vm383_vm2, %v624_v14  ;;  %2619 = vmatmul.mubr.msk.f32.vlgmr.msra.gmra.mrb[4].mxu1 %vm127_vm0, %v624_v14 }
 0x8b1   :  { %629 = vst.msk [vmem:[#allocation4 + $0x10] sm:$0xf0] %vm386_vm3, %v624_v14  ;;  %2738 = vmatpush1.bf16.msra.mxu1 %v3261_v18  ;;  %938 = vmatprep.mubr.f32.mxu1 %v3113_v0 }
 0x8b2   :  { %2740 = vmatprep.subr.bf16.mxu1 %v3264_v22 }
 0x8b5   :  { %2742 = vmatpush1.bf16.msra.mxu1 %v3267_v25 }
 0x8b6   :  { %2752 = vmatprep.subr.bf16.mxu1 %v3259_v17 }
 0x983   :  { %v702_v15 = vpop.f32.mrb[4].mxu1 }
 0x984   :  { %v704_v16 = vpop.f32.mrb[5].mxu1  ;;  %v707_v23 = vadd.f32 %v702_v15, %v3309_v51 }
 0x985   :  { %v712_v20 = vcombine.high %v704_v16, %v704_v16 }
 0x987   :  { %v714_v21 = vadd.f32 %v712_v20, %v709_v19 }
 0x989   :  { %v716_v24 = vcombine.low %v714_v21, %v714_v21 }
 0x98b   :  { %v718_v26 = vsel %vm353_vm1, %v707_v23, %v716_v24 }
 0x98c   :  { %2907 = vtanh.f32 %v718_v26  ;;  %v2620_v28 = vmul.f32 -1.442695, %v718_v26 }
 0x98e   :  { %2909 = vpow2.f32 %v2620_v28 }
 0x996   :  { %v2908_v27 = vpop.eup %2907 }
 0x997   :  { %728 = vrot.lane.b32.xlu0 %v2908_v27, %s3109_s2 }
 0x998   :  { %v2910_v29 = vpop.eup %2909 }
 0x999   :  { %v722_v32 = vadd.f32 1.0, %v2910_v29 }
 0x99b   :  { %2911 = vrcp.f32 %v722_v32 }
 0x9a5   :  { %v2912_v17 = vpop.eup %2911 }
 0x9a6   :  { %v726_v36 = vmul.f32 %v2912_v17, %v615_v10  ;;  %v947_v10 = vrot.slane %v3307_v50, 4 }
 0xa09   :  { %v729_v34 = vpop.permute.xlu0 %728 }
 0xa0a   :  { %v731_v35 = vmul.f32 %v2912_v17, %v729_v34 }
 0xa0c   :  { %733 = vrot.lane.b32.xlu1 %v731_v35, %s3114_s3 }
 0xa7e   :  { %v734_v37 = vpop.permute.xlu1 %733 }
 0xa7f   :  { %v736_v38 = vadd.f32 %v734_v37, %v726_v36 }
 0xa81   :  { %2913 = vtanh.f32 %v736_v38 }
 0xa8b   :  { %v2914_v39 = vpop.eup %2913 }
 0xa8c   :  { %739 = vrot.lane.b32.xlu0 %v2914_v39, %s3109_s2 }
 0xafe   :  { %v740_v40 = vpop.permute.xlu0 %739 }
 0xaff   :  { %v742_v41 = vmul.f32 %v2912_v17, %v740_v40  ;;  %v1066_v17 = vrot.slane %v3304_v44, 4 }
 0xb01   :  { %744 = vrot.lane.b32.xlu1 %v742_v41, %s3114_s3 }
 0xb73   :  { %v745_v43 = vpop.permute.xlu1 %744 }
 0xb74   :  { %748 = vst.msk [vmem:[#allocation3 + $0xc] sm:$0xf] %vm383_vm2, %v745_v43  ;;  %2621 = vmatmul.mubr.msk.f32.vlgmr.msra.gmra.mrb[10].mxu0 %vm127_vm0, %v745_v43 }
 0xb75   :  { %750 = vst.msk [vmem:[#allocation4 + $0xc] sm:$0xf0] %vm386_vm3, %v745_v43  ;;  %2746 = vmatpush1.bf16.msra.mxu0 %v3261_v18  ;;  %1057 = vmatprep.mubr.f32.mxu0 %v3113_v0 }
 0xb76   :  { %2748 = vmatprep.subr.bf16.mxu0 %v3264_v22 }
 0xb79   :  { %2750 = vmatpush1.bf16.msra.mxu0 %v3267_v25 }
 0xc47   :  { %v821_v45 = vpop.f32.mrb[10].mxu0 }
 0xc48   :  { %v823_v46 = vpop.f32.mrb[11].mxu0  ;;  %v826_v52 = vadd.f32 %v821_v45, %v3311_v55 }
 0xc49   :  { %v831_v48 = vcombine.high %v823_v46, %v823_v46 }
 0xc4b   :  { %v833_v49 = vadd.f32 %v831_v48, %v828_v47 }
 0xc4d   :  { %v835_v53 = vcombine.low %v833_v49, %v833_v49 }
 0xc4f   :  { %v837_v54 = vsel %vm353_vm1, %v826_v52, %v835_v53 }
 0xc50   :  { %2915 = vtanh.f32 %v837_v54  ;;  %v2622_v58 = vmul.f32 -1.442695, %v837_v54 }
 0xc52   :  { %2917 = vpow2.f32 %v2622_v58 }
 0xc5a   :  { %v2916_v57 = vpop.eup %2915 }
 0xc5b   :  { %847 = vrot.lane.b32.xlu0 %v2916_v57, %s3109_s2 }
 0xc5c   :  { %v2918_v59 = vpop.eup %2917 }
 0xc5d   :  { %v841_v60 = vadd.f32 1.0, %v2918_v59  ;;  %v1185_v59 = vrot.slane %v3302_v42, 4 }
 0xc5f   :  { %2919 = vrcp.f32 %v841_v60 }
 0xc69   :  { %v2920_v63 = vpop.eup %2919 }
 0xc6a   :  { %v845_v51 = vmul.f32 %v2920_v63, %v736_v38 }
 0xccd   :  { %v848_v1 = vpop.permute.xlu0 %847 }
 0xcce   :  { %v850_v2 = vmul.f32 %v2920_v63, %v848_v1 }
 0xcd0   :  { %852 = vrot.lane.b32.xlu1 %v850_v2, %s3114_s3 }
 0xd42   :  { %v853_v3 = vpop.permute.xlu1 %852 }
 0xd43   :  { %v855_v55 = vadd.f32 %v853_v3, %v845_v51 }
 0xd45   :  { %2921 = vtanh.f32 %v855_v55 }
 0xd4f   :  { %v2922_v4 = vpop.eup %2921 }
 0xd50   :  { %858 = vrot.lane.b32.xlu0 %v2922_v4, %s3109_s2 }
 0xdc2   :  { %v859_v5 = vpop.permute.xlu0 %858 }
 0xdc3   :  { %v861_v6 = vmul.f32 %v2920_v63, %v859_v5 }
 0xdc5   :  { %863 = vrot.lane.b32.xlu1 %v861_v6, %s3114_s3 }
 0xe37   :  { %v864_v7 = vpop.permute.xlu1 %863 }
 0xe38   :  { %867 = vst.msk [vmem:[#allocation3 + $0x10] sm:$0xf] %vm383_vm2, %v864_v7  ;;  %2623 = vmatmul.mubr.msk.f32.vlgmr.msra.gmra.mrb[6].mxu1 %vm127_vm0, %v864_v7 }
 0xe39   :  { %869 = vst.msk [vmem:[#allocation4 + $0x8] sm:$0xf0] %vm386_vm3, %v864_v7  ;;  %2754 = vmatpush1.bf16.msra.mxu1 %v3261_v18  ;;  %1176 = vmatprep.mubr.f32.mxu1 %v3113_v0 }
 0xe3a   :  { %2756 = vmatprep.subr.bf16.mxu1 %v3264_v22 }
 0xe3d   :  { %2758 = vmatpush1.bf16.msra.mxu1 %v3267_v25 }
 0xf0b   :  { %v940_v8 = vpop.f32.mrb[6].mxu1 }
 0xf0c   :  { %v942_v9 = vpop.f32.mrb[7].mxu1  ;;  %v945_v13 = vadd.f32 %v940_v8, %v3313_v56 }
 0xf0d   :  { %v950_v11 = vcombine.high %v942_v9, %v942_v9 }
 0xf0f   :  { %v952_v12 = vadd.f32 %v950_v11, %v947_v10  ;;  %v1251_v11 = vld [vmem:[#allocation9 + $0x48] sm:$0xff] }
 0xf11   :  { %v954_v14 = vcombine.low %v952_v12, %v952_v12  ;;  %v1253_v12 = vld [vmem:[#allocation9 + $0x58] sm:$0xff] }
 0xf13   :  { %v956_v15 = vsel %vm353_vm1, %v945_v13, %v954_v14  ;;  %v2759_v13 = vpack.c.bf16 %v1253_v12, %v1251_v11  ;;  %v1250_v14 = vld [vmem:[#allocation9 + $0x40] sm:$0xff] }
 0xf14   :  { %2923 = vtanh.f32 %v956_v15  ;;  %v2624_v18 = vmul.f32 -1.442695, %v956_v15  ;;  %v1252_v15 = vld [vmem:[#allocation9 + $0x50] sm:$0xff] }
 0xf15   :  { %2760 = vmatprep.subr.bf16.mxu0 %v2759_v13 }
 0xf16   :  { %2925 = vpow2.f32 %v2624_v18  ;;  %v1255_v18 = vld [vmem:[#allocation9 + $0x68] sm:$0xff] }
 0xf1e   :  { %v2924_v16 = vpop.eup %2923 }
 0xf1f   :  { %966 = vrot.lane.b32.xlu0 %v2924_v16, %s3109_s2  ;;  %v2761_v16 = vpack.c.bf16 %v1252_v15, %v1250_v14 }
 0xf20   :  { %v2926_v22 = vpop.eup %2925 }
 0xf21   :  { %v960_v19 = vadd.f32 1.0, %v2926_v22  ;;  %v1257_v22 = vld [vmem:[#allocation9 + $0x78] sm:$0xff] }
 0xf23   :  { %2927 = vrcp.f32 %v960_v19  ;;  %v1254_v19 = vld [vmem:[#allocation9 + $0x60] sm:$0xff] }
 0xf2d   :  { %v2928_v25 = vpop.eup %2927 }
 0xf2e   :  { %v964_v50 = vmul.f32 %v2928_v25, %v855_v55 }
 0xf91   :  { %v967_v20 = vpop.permute.xlu0 %966 }
 0xf92   :  { %v969_v21 = vmul.f32 %v2928_v25, %v967_v20  ;;  %v1256_v20 = vld [vmem:[#allocation9 + $0x70] sm:$0xff] }
 0xf94   :  { %971 = vrot.lane.b32.xlu1 %v969_v21, %s3114_s3  ;;  %v1243_v21 = vld [vmem:[#allocation9 + $0x8] sm:$0xff] }
0x1006   :  { %v972_v23 = vpop.permute.xlu1 %971 }
0x1007   :  { %v974_v56 = vadd.f32 %v972_v23, %v964_v50  ;;  %v1245_v50 = vld [vmem:[#allocation9 + $0x18] sm:$0xff]  ;;  %v2765_v23 = vpack.c.bf16 %v1256_v20, %v1254_v19 }
0x1009   :  { %2929 = vtanh.f32 %v974_v56 }
0x1013   :  { %v2930_v24 = vpop.eup %2929 }
0x1014   :  { %977 = vrot.lane.b32.xlu0 %v2930_v24, %s3109_s2 }
0x1086   :  { %v978_v26 = vpop.permute.xlu0 %977 }
0x1087   :  { %v980_v27 = vmul.f32 %v2928_v25, %v978_v26  ;;  %v2763_v25 = vpack.c.bf16 %v1257_v22, %v1255_v18 }
0x1089   :  { %982 = vrot.lane.b32.xlu1 %v980_v27, %s3114_s3  ;;  %v1529_v27 = vld [vmem:[#allocation10 + $0x8] sm:$0xff] }
0x10fb   :  { %v983_v28 = vpop.permute.xlu1 %982 }
0x10fc   :  { %986 = vst.msk [vmem:[#allocation3 + $0x14] sm:$0xf] %vm383_vm2, %v983_v28  ;;  %2625 = vmatmul.mubr.msk.f32.vlgmr.msra.gmra.mrb[12].mxu0 %vm127_vm0, %v983_v28 }
0x10fd   :  { %988 = vst.msk [vmem:[#allocation4 + $0x4] sm:$0xf0] %vm386_vm3, %v983_v28  ;;  %1342 = vmatprep.mubr.f32.mxu0 %v3113_v0  ;;  %2762 = vmatpush1.bf16.msra.mxu0 %v2761_v16  ;;  %v1531_v28 = vld [vmem:[#allocation10 + $0x18] sm:$0xff] }
0x10fe   :  { %2764 = vmatprep.subr.bf16.mxu0 %v2763_v25 }
0x1101   :  { %2766 = vmatpush1.bf16.msra.mxu0 %v2765_v23 }
0x11cf   :  { %v1059_v29 = vpop.f32.mrb[12].mxu0 }
0x11d0   :  { %v1061_v32 = vpop.f32.mrb[13].mxu0  ;;  %v1064_v36 = vadd.f32 %v1059_v29, %v3315_v61  ;;  %v3420_v29 = vpack.c.bf16 %v1531_v28, %v1529_v27 }
0x11d1   :  { %v1069_v34 = vcombine.high %v1061_v32, %v1061_v32  ;;  %v1528_v32 = vld [vmem:[#allocation10] sm:$0xff] }
0x11d2   :  { %2776 = vmatprep.subr.bf16.mxu1 %v3420_v29 }
0x11d3   :  { %v1071_v35 = vadd.f32 %v1069_v34, %v1066_v17  ;;  %v1530_v17 = vld [vmem:[#allocation10 + $0x10] sm:$0xff] }
0x11d4   :  { %v3422_v34 = vpack.c.bf16 %v1530_v17, %v1528_v32 }
0x11d5   :  { %v1073_v37 = vcombine.low %v1071_v35, %v1071_v35  ;;  %v1533_v35 = vld [vmem:[#allocation10 + $0x28] sm:$0xff] }
0x11d7   :  { %v1075_v38 = vsel %vm353_vm1, %v1064_v36, %v1073_v37  ;;  %v1535_v36 = vld [vmem:[#allocation10 + $0x38] sm:$0xff] }
0x11d8   :  { %2931 = vtanh.f32 %v1075_v38  ;;  %v2626_v40 = vmul.f32 -1.442695, %v1075_v38  ;;  %v3426_v37 = vpack.c.bf16 %v1535_v36, %v1533_v35  ;;  %v1532_v38 = vld [vmem:[#allocation10 + $0x20] sm:$0xff] }
0x11da   :  { %2933 = vpow2.f32 %v2626_v40 }
0x11e2   :  { %v2932_v39 = vpop.eup %2931 }
0x11e3   :  { %1085 = vrot.lane.b32.xlu0 %v2932_v39, %s3109_s2  ;;  %v1534_v39 = vld [vmem:[#allocation10 + $0x30] sm:$0xff] }
0x11e4   :  { %v2934_v41 = vpop.eup %2933  ;;  %v3428_v40 = vpack.c.bf16 %v1534_v39, %v1532_v38 }
0x11e5   :  { %v1079_v43 = vadd.f32 1.0, %v2934_v41 }
0x11e7   :  { %2935 = vrcp.f32 %v1079_v43  ;;  %v1242_v43 = vld [vmem:[#allocation9] sm:$0xff] }
0x11f1   :  { %v2936_v45 = vpop.eup %2935 }
0x11f2   :  { %v1083_v44 = vmul.f32 %v2936_v45, %v974_v56  ;;  %v2767_v56 = vpack.c.bf16 %v1245_v50, %v1243_v21 }
0x11f4   :  { %2768 = vmatprep.subr.bf16.mxu0 %v2767_v56 }
0x1255   :  { %v1086_v46 = vpop.permute.xlu0 %1085 }
0x1256   :  { %v1088_v47 = vmul.f32 %v2936_v45, %v1086_v46  ;;  %v1247_v46 = vld [vmem:[#allocation9 + $0x28] sm:$0xff] }
0x1258   :  { %1090 = vrot.lane.b32.xlu1 %v1088_v47, %s3114_s3  ;;  %v1249_v47 = vld [vmem:[#allocation9 + $0x38] sm:$0xff] }
0x12ca   :  { %v1091_v48 = vpop.permute.xlu1 %1090 }
0x12cb   :  { %v1093_v61 = vadd.f32 %v1091_v48, %v1083_v44  ;;  %v1246_v48 = vld [vmem:[#allocation9 + $0x20] sm:$0xff] }
0x12cd   :  { %2937 = vtanh.f32 %v1093_v61 }
0x12d7   :  { %v2938_v49 = vpop.eup %2937 }
0x12d8   :  { %1096 = vrot.lane.b32.xlu0 %v2938_v49, %s3109_s2 }
0x134a   :  { %v1097_v52 = vpop.permute.xlu0 %1096 }
0x134b   :  { %v1099_v53 = vmul.f32 %v2936_v45, %v1097_v52  ;;  %v1244_v45 = vld [vmem:[#allocation9 + $0x10] sm:$0xff]  ;;  %v2771_v52 = vpack.c.bf16 %v1249_v47, %v1247_v46 }
0x134c   :  { %v2769_v44 = vpack.c.bf16 %v1244_v45, %v1242_v43 }
0x134d   :  { %1101 = vrot.lane.b32.xlu1 %v1099_v53, %s3114_s3 }
0x13bf   :  { %v1102_v54 = vpop.permute.xlu1 %1101 }
0x13c0   :  { %1105 = vst.msk [vmem:[#allocation3 + $0x18] sm:$0xf] %vm383_vm2, %v1102_v54  ;;  %2627 = vmatmul.mubr.msk.f32.vlgmr.msra.gmra.mrb[8].mxu1 %vm127_vm0, %v1102_v54 }
0x13c1   :  { %1107 = vst.msk [vmem:[#allocation4] sm:$0xf0] %vm386_vm3, %v1102_v54  ;;  %1602 = vmatprep.mubr.f32.mxu1 %v3113_v0  ;;  %2778 = vmatpush1.bf16.msra.mxu1 %v3422_v34  ;;  %v2876_v54 = vld [vmem:[#allocation4 + $0x8] sm:$0xff]  }
0x13c2   :  { %2780 = vmatprep.subr.bf16.mxu1 %v3426_v37 }
0x13c5   :  { %2782 = vmatpush1.bf16.msra.mxu1 %v3428_v40 }
0x13c6   :  { %2784 = vmatprep.subr.bf16.mxu1 %v3420_v29 }
0x13c8   :  { %1603 = vmatmul.mubr.f32.vlgmr.msra.gmra.mrb[10].mxu1 %v3113_v0 }
0x13c9   :  { %2786 = vmatpush1.bf16.msra.mxu1 %v3422_v34  ;;  %1716 = vmatprep.mubr.f32.mxu1 %v3113_v0 }
0x13ca   :  { %2788 = vmatprep.subr.bf16.mxu1 %v3426_v37 }
0x13cd   :  { %2790 = vmatpush1.bf16.msra.mxu1 %v3428_v40 }
0x13ce   :  { %2792 = vmatprep.subr.bf16.mxu1 %v3420_v29 }
0x1493   :  { %v1178_v57 = vpop.f32.mrb[8].mxu1 }
0x1494   :  { %v1180_v58 = vpop.f32.mrb[9].mxu1  ;;  %v1183_v1 = vadd.f32 %v1178_v57, %v3317_v62  ;;  %v2877_v57 = vld [vmem:[#allocation4 + $0x10] sm:$0xff]  }
0x1495   :  { %v1188_v60 = vcombine.high %v1180_v58, %v1180_v58  ;;  %v2878_v58 = vld [vmem:[#allocation4 + $0x18] sm:$0xff]  }
0x1497   :  { %v1190_v63 = vadd.f32 %v1188_v60, %v1185_v59  ;;  %v2879_v59 = vld [vmem:[#allocation3] sm:$0xff]   ;;  %v2880_v60 = vld [vmem:[#allocation3 + $0x8] sm:$0xff]  }
0x1499   :  { %v1192_v2 = vcombine.low %v1190_v63, %v1190_v63  ;;  %v2881_v63 = vld [vmem:[#allocation3 + $0x10] sm:$0xff]  }
0x149b   :  { %v1194_v51 = vsel %vm353_vm1, %v1183_v1, %v1192_v2  ;;  %v1604_v2 = vpop.f32.mrb[10].mxu1 }
0x149c   :  { %2939 = vtanh.f32 %v1194_v51  ;;  %v2628_v55 = vmul.f32 -1.442695, %v1194_v51  ;;  %v1606_v51 = vpop.f32.mrb[11].mxu1 }
0x149d   :  { %v1614_v56 = vcombine.high %v1606_v51, %v1606_v51 }
0x149e   :  { %2941 = vpow2.f32 %v2628_v55 }
0x14a6   :  { %v2940_v3 = vpop.eup %2939 }
0x14a7   :  { %1204 = vrot.lane.b32.xlu0 %v2940_v3, %s3109_s2  ;;  %v1476_v3 = vld [vmem:[%s3612_s6] sm:$0x3] }
0x14a8   :  { %v2942_v4 = vpop.eup %2941  ;;  %v1481_v55 = vrot.slane %v1476_v3, %v107_v31 }
0x14a9   :  { %v1198_v5 = vadd.f32 1.0, %v2942_v4  ;;  %v1485_v4 = vrot.slane %v1476_v3, %v111_v33 }
0x14ab   :  { %2943 = vrcp.f32 %v1198_v5 }
0x14b5   :  { %v2944_v6 = vpop.eup %2943 }
0x14b6   :  { %v1202_v42 = vmul.f32 %v2944_v6, %v1093_v61  ;;  %v1248_v61 = vld [vmem:[#allocation9 + $0x30] sm:$0xff] }
0x14b7   :  { %v2773_v53 = vpack.c.bf16 %v1248_v61, %v1246_v48 }
0x1519   :  { %v1205_v7 = vpop.permute.xlu0 %1204 }
0x151a   :  { %v1207_v8 = vmul.f32 %v2944_v6, %v1205_v7 }
0x151c   :  { %1209 = vrot.lane.b32.xlu1 %v1207_v8, %s3114_s3 }
0x158e   :  { %v1210_v9 = vpop.permute.xlu1 %1209 }
0x158f   :  { %v1212_v62 = vadd.f32 %v1210_v9, %v1202_v42 }
0x1591   :  { %2945 = vtanh.f32 %v1212_v62 }
0x159b   :  { %v2946_v10 = vpop.eup %2945 }
0x159c   :  { %1215 = vrot.lane.b32.xlu0 %v2946_v10, %s3109_s2 }
0x160e   :  { %v1216_v24 = vpop.permute.xlu0 %1215 }
0x160f   :  { %v1218_v26 = vmul.f32 %v2944_v6, %v1216_v24 }
0x1611   :  { %1220 = vrot.lane.b32.xlu1 %v1218_v26, %s3114_s3 }
0x1683   :  { %v1221_v41 = vpop.permute.xlu1 %1220 }
0x1684   :  { %1224 = vst.msk [vmem:[#allocation3 + $0x1c] sm:$0xf] %vm383_vm2, %v1221_v41 }
0x1685   :  { %1225 = vst.msk [vmem:[#allocation4 - $0x4] sm:$0xf0] %vm386_vm3, %v1221_v41 }
0x168b   :  { %v2882_v1 = vld [vmem:[#allocation3 + $0x18] sm:$0xff]  }
0x168c   :  { %v2875_v49 = vld [vmem:[#allocation4] sm:$0xff]  }
0x168d   :  { %2629 = vmatmul.mubr.msk.f32.vlgmr.msra.gmra.mrb[14].mxu0 %vm127_vm0, %v2875_v49 }
0x168e   :  { %2770 = vmatpush1.bf16.msra.mxu0 %v2769_v44  ;;  %1348 = vmatprep.mubr.f32.mxu0 %v3113_v0 }
0x168f   :  { %2772 = vmatprep.subr.bf16.mxu0 %v2771_v52 }
0x1691   :  { %2630 = vmatmul.mubr.msk.f32.gmra.mrb[16].mxu0 %vm127_vm0, %v2876_v54 }
0x1692   :  { %1354 = vmatprep.mubr.f32.mxu0 %v3113_v0  ;;  %2774 = vmatpush1.bf16.msra.mxu0 %v2773_v53 }
0x1693   :  { %2808 = vmatprep.subr.bf16.mxu0 %v3420_v29 }
0x1695   :  { %2631 = vmatmul.mubr.msk.f32.gmra.mrb[18].mxu0 %vm127_vm0, %v2877_v57 }
0x1696   :  { %1360 = vmatprep.mubr.f32.mxu0 %v3113_v0 }
0x1699   :  { %2632 = vmatmul.mubr.msk.f32.gmra.mrb[20].mxu0 %vm127_vm0, %v2878_v58 }
0x169a   :  { %1451 = vmatprep.mubr.f32.mxu0 %v3113_v0 }
0x169d   :  { %2633 = vmatmul.mubr.msk.f32.vlgmr.msra.gmra.mrb[14].mxu0 %vm127_vm0, %v2879_v59 }
0x169e   :  { %1457 = vmatprep.mubr.f32.mxu0 %v3113_v0  ;;  %2810 = vmatpush1.bf16.msra.mxu0 %v3422_v34 }
0x169f   :  { %2812 = vmatprep.subr.bf16.mxu0 %v3426_v37 }
0x16a1   :  { %2634 = vmatmul.mubr.msk.f32.gmra.mrb[16].mxu0 %vm127_vm0, %v2880_v60 }
0x16a2   :  { %1463 = vmatprep.mubr.f32.mxu0 %v3113_v0  ;;  %2814 = vmatpush1.bf16.msra.mxu0 %v3428_v40 }
0x16a3   :  { %2824 = vmatprep.subr.bf16.mxu0 %v3420_v29 }
0x16a5   :  { %2635 = vmatmul.mubr.msk.f32.gmra.mrb[18].mxu0 %vm127_vm0, %v2881_v63 }
0x16a6   :  { %1469 = vmatprep.mubr.f32.mxu0 %v3113_v0 }
0x16a9   :  { %2636 = vmatmul.mubr.msk.f32.gmra.mrb[20].mxu0 %vm127_vm0, %v2882_v1 }
0x16aa   :  { %2056 = vmatprep.mubr.f32.mxu0 %v3113_v0 }
0x1770   :  { %v1453_v5 = vpop.f32.mrb[14].mxu0 }
0x1771   :  { %v1488_v6 = vadd.f32 %v1481_v55, %v1453_v5  ;;  %v1455_v7 = vpop.f32.mrb[15].mxu0 }
0x1772   :  { %v1489_v8 = vadd.f32 %v1485_v4, %v1455_v7 }
0x1774   :  { %v1459_v42 = vpop.f32.mrb[16].mxu0  ;;  %v3469_v9 = vcombine.low %v1488_v6, %v1489_v8  ;;  %v3471_v62 = vcombine.high %v1488_v6, %v1489_v8 }
0x1775   :  { %v1490_v10 = vadd.f32 %v1481_v55, %v1459_v42  ;;  %v1461_v11 = vpop.f32.mrb[17].mxu0 }
0x1776   :  { %v1491_v12 = vadd.f32 %v1485_v4, %v1461_v11  ;;  %v1609_v13 = vadd.f32 %v1604_v2, %v3469_v9 }
0x1778   :  { %v1465_v14 = vpop.f32.mrb[18].mxu0  ;;  %v3474_v15 = vcombine.low %v1490_v10, %v1491_v12  ;;  %v3476_v31 = vcombine.high %v1490_v10, %v1491_v12 }
0x1779   :  { %v1492_v30 = vadd.f32 %v1481_v55, %v1465_v14  ;;  %v1467_v33 = vpop.f32.mrb[19].mxu0 }
0x177a   :  { %v1493_v16 = vadd.f32 %v1485_v4, %v1467_v33 }
0x177c   :  { %v3478_v18 = vcombine.low %v1492_v30, %v1493_v16  ;;  %v3480_v22 = vcombine.high %v1492_v30, %v1493_v16  ;;  %v1471_v19 = vpop.f32.mrb[20].mxu0 }
0x177d   :  { %v1494_v25 = vadd.f32 %v1481_v55, %v1471_v19  ;;  %v1473_v20 = vpop.f32.mrb[21].mxu0 }
0x177e   :  { %v1495_v21 = vadd.f32 %v1485_v4, %v1473_v20  ;;  %v1839_v14 = vrot.slane %v3480_v22, 4 }
0x1780   :  { %v3482_v50 = vcombine.low %v1494_v25, %v1495_v21  ;;  %v3484_v23 = vcombine.high %v1494_v25, %v1495_v21 }
0x1782   :  { %v1611_v24 = vrot.slane %v3484_v23, 4  ;;  %v1725_v53 = vrot.slane %v3482_v50, 4 }
0x1784   :  { %v1616_v26 = vadd.f32 %v1614_v56, %v1611_v24 }
0x1786   :  { %v1618_v27 = vcombine.low %v1616_v26, %v1616_v26 }
0x1788   :  { %v1620_v28 = vsel %vm353_vm1, %v1609_v13, %v1618_v27 }
0x1789   :  { %2947 = vtanh.f32 %v1620_v28  ;;  %v2637_v17 = vmul.f32 -1.442695, %v1620_v28 }
0x178b   :  { %2949 = vpow2.f32 %v2637_v17 }
0x1793   :  { %v2948_v32 = vpop.eup %2947 }
0x1794   :  { %1630 = vrot.lane.b32.xlu0 %v2948_v32, %s3109_s2 }
0x1795   :  { %v2950_v35 = vpop.eup %2949 }
0x1796   :  { %v1624_v36 = vadd.f32 1.0, %v2950_v35 }
0x1798   :  { %2951 = vrcp.f32 %v1624_v36 }
0x17a2   :  { %v2952_v38 = vpop.eup %2951 }
0x17a3   :  { %v1628_v43 = vmul.f32 0.0, %v2952_v38 }
0x1806   :  { %v1631_v39 = vpop.permute.xlu0 %1630 }
0x1807   :  { %v1633_v41 = vmul.f32 %v2952_v38, %v1631_v39 }
0x1809   :  { %1635 = vrot.lane.b32.xlu1 %v1633_v41, %s3114_s3 }
0x187b   :  { %v1636_v45 = vpop.permute.xlu1 %1635 }
0x187c   :  { %v1638_v46 = vadd.f32 %v1636_v45, %v1628_v43 }
0x187e   :  { %2953 = vtanh.f32 %v1638_v46 }
0x1888   :  { %v2954_v47 = vpop.eup %2953 }
0x1889   :  { %1641 = vrot.lane.b32.xlu0 %v2954_v47, %s3109_s2 }
0x18fb   :  { %v1642_v44 = vpop.permute.xlu0 %1641 }
0x18fc   :  { %v1644_v48 = vmul.f32 %v2952_v38, %v1642_v44 }
0x18fe   :  { %1648 = vrot.lane.b32.xlu1 %v1644_v48, %s3114_s3 }
0x1970   :  { %v1649_v61 = vpop.permute.xlu1 %1648 }
0x1971   :  { %2638 = vmatmul.mubr.msk.f32.vlgmr.msra.gmra.mrb[12].mxu1 %vm127_vm0, %v1649_v61 }
0x1972   :  { %2794 = vmatpush1.bf16.msra.mxu1 %v3422_v34  ;;  %1830 = vmatprep.mubr.f32.mxu1 %v3113_v0 }
0x1973   :  { %2796 = vmatprep.subr.bf16.mxu1 %v3426_v37 }
0x1976   :  { %2798 = vmatpush1.bf16.msra.mxu1 %v3428_v40 }
0x1977   :  { %2800 = vmatprep.subr.bf16.mxu1 %v3420_v29 }
0x1a44   :  { %v1718_v49 = vpop.f32.mrb[12].mxu1 }
0x1a45   :  { %v1720_v52 = vpop.f32.mrb[13].mxu1  ;;  %v1723_v58 = vadd.f32 %v1718_v49, %v3471_v62 }
0x1a46   :  { %v1728_v54 = vcombine.high %v1720_v52, %v1720_v52 }
0x1a48   :  { %v1730_v57 = vadd.f32 %v1728_v54, %v1725_v53 }
0x1a4a   :  { %v1732_v59 = vcombine.low %v1730_v57, %v1730_v57 }
0x1a4c   :  { %v1734_v60 = vsel %vm353_vm1, %v1723_v58, %v1732_v59 }
0x1a4d   :  { %2955 = vtanh.f32 %v1734_v60  ;;  %v2639_v1 = vmul.f32 -1.442695, %v1734_v60 }
0x1a4f   :  { %2957 = vpow2.f32 %v2639_v1 }
0x1a57   :  { %v2956_v63 = vpop.eup %2955 }
0x1a58   :  { %1744 = vrot.lane.b32.xlu0 %v2956_v63, %s3109_s2 }
0x1a59   :  { %v2958_v2 = vpop.eup %2957 }
0x1a5a   :  { %v1738_v51 = vadd.f32 1.0, %v2958_v2 }
0x1a5c   :  { %2959 = vrcp.f32 %v1738_v51 }
0x1a66   :  { %v2960_v3 = vpop.eup %2959 }
0x1a67   :  { %v1742_v5 = vmul.f32 %v2960_v3, %v1638_v46  ;;  %v1953_v46 = vrot.slane %v3478_v18, 4 }
0x1aca   :  { %v1745_v55 = vpop.permute.xlu0 %1744 }
0x1acb   :  { %v1747_v4 = vmul.f32 %v2960_v3, %v1745_v55 }
0x1acd   :  { %1749 = vrot.lane.b32.xlu1 %v1747_v4, %s3114_s3 }
0x1b3f   :  { %v1750_v6 = vpop.permute.xlu1 %1749 }
0x1b40   :  { %v1752_v7 = vadd.f32 %v1750_v6, %v1742_v5  ;;  %v2065_v6 = vrot.slane %v3476_v31, 4 }
0x1b42   :  { %2961 = vtanh.f32 %v1752_v7 }
0x1b4c   :  { %v2962_v8 = vpop.eup %2961 }
0x1b4d   :  { %1755 = vrot.lane.b32.xlu0 %v2962_v8, %s3109_s2 }
0x1bbf   :  { %v1756_v42 = vpop.permute.xlu0 %1755 }
0x1bc0   :  { %v1758_v10 = vmul.f32 %v2960_v3, %v1756_v42 }
0x1bc2   :  { %1762 = vrot.lane.b32.xlu1 %v1758_v10, %s3114_s3 }
0x1c34   :  { %v1763_v11 = vpop.permute.xlu1 %1762 }
0x1c35   :  { %2640 = vmatmul.mubr.msk.f32.vlgmr.msra.gmra.mrb[14].mxu1 %vm127_vm0, %v1763_v11 }
0x1c36   :  { %2802 = vmatpush1.bf16.msra.mxu1 %v3422_v34  ;;  %1944 = vmatprep.mubr.f32.mxu1 %v3113_v0 }
0x1c37   :  { %2804 = vmatprep.subr.bf16.mxu1 %v3426_v37 }
0x1c3a   :  { %2806 = vmatpush1.bf16.msra.mxu1 %v3428_v40 }
0x1c3b   :  { %2816 = vmatprep.subr.bf16.mxu1 %v3420_v29 }
0x1d08   :  { %v1832_v12 = vpop.f32.mrb[14].mxu1 }
0x1d09   :  { %v1834_v13 = vpop.f32.mrb[15].mxu1  ;;  %v1837_v16 = vadd.f32 %v1832_v12, %v3474_v15 }
0x1d0a   :  { %v1842_v30 = vcombine.high %v1834_v13, %v1834_v13 }
0x1d0c   :  { %v1844_v33 = vadd.f32 %v1842_v30, %v1839_v14 }
0x1d0e   :  { %v1846_v19 = vcombine.low %v1844_v33, %v1844_v33 }
0x1d10   :  { %v1848_v25 = vsel %vm353_vm1, %v1837_v16, %v1846_v19 }
0x1d11   :  { %2963 = vtanh.f32 %v1848_v25  ;;  %v2641_v21 = vmul.f32 -1.442695, %v1848_v25 }
0x1d13   :  { %2965 = vpow2.f32 %v2641_v21 }
0x1d1b   :  { %v2964_v20 = vpop.eup %2963 }
0x1d1c   :  { %1858 = vrot.lane.b32.xlu0 %v2964_v20, %s3109_s2 }
0x1d1d   :  { %v2966_v56 = vpop.eup %2965 }
0x1d1e   :  { %v1852_v24 = vadd.f32 1.0, %v2966_v56 }
0x1d20   :  { %2967 = vrcp.f32 %v1852_v24 }
0x1d2a   :  { %v2968_v26 = vpop.eup %2967 }
0x1d2b   :  { %v1856_v32 = vmul.f32 %v2968_v26, %v1752_v7 }
0x1d8e   :  { %v1859_v27 = vpop.permute.xlu0 %1858 }
0x1d8f   :  { %v1861_v28 = vmul.f32 %v2968_v26, %v1859_v27 }
0x1d91   :  { %1863 = vrot.lane.b32.xlu1 %v1861_v28, %s3114_s3  ;;  %v2177_v28 = vrot.slane %v3474_v15, 4 }
0x1e03   :  { %v1864_v17 = vpop.permute.xlu1 %1863 }
0x1e04   :  { %v1866_v35 = vadd.f32 %v1864_v17, %v1856_v32 }
0x1e06   :  { %2969 = vtanh.f32 %v1866_v35 }
0x1e10   :  { %v2970_v36 = vpop.eup %2969 }
0x1e11   :  { %1869 = vrot.lane.b32.xlu0 %v2970_v36, %s3109_s2 }
0x1e83   :  { %v1870_v38 = vpop.permute.xlu0 %1869 }
0x1e84   :  { %v1872_v39 = vmul.f32 %v2968_v26, %v1870_v38 }
0x1e86   :  { %1876 = vrot.lane.b32.xlu1 %v1872_v39, %s3114_s3 }
0x1ef8   :  { %v1877_v41 = vpop.permute.xlu1 %1876 }
0x1ef9   :  { %2642 = vmatmul.mubr.msk.f32.vlgmr.msra.gmra.mrb[16].mxu1 %vm127_vm0, %v1877_v41 }
0x1efa   :  { %2818 = vmatpush1.bf16.msra.mxu1 %v3422_v34  ;;  %2168 = vmatprep.mubr.f32.mxu1 %v3113_v0 }
0x1efb   :  { %2820 = vmatprep.subr.bf16.mxu1 %v3426_v37 }
0x1efe   :  { %2822 = vmatpush1.bf16.msra.mxu1 %v3428_v40 }
0x1eff   :  { %2832 = vmatprep.subr.bf16.mxu1 %v3420_v29 }
0x1fcc   :  { %v1946_v43 = vpop.f32.mrb[16].mxu1 }
0x1fcd   :  { %v1948_v45 = vpop.f32.mrb[17].mxu1  ;;  %v1951_v48 = vadd.f32 %v1946_v43, %v3476_v31 }
0x1fce   :  { %v1956_v47 = vcombine.high %v1948_v45, %v1948_v45 }
0x1fd0   :  { %v1958_v44 = vadd.f32 %v1956_v47, %v1953_v46 }
0x1fd2   :  { %v1960_v61 = vcombine.low %v1958_v44, %v1958_v44 }
0x1fd4   :  { %v1962_v49 = vsel %vm353_vm1, %v1951_v48, %v1960_v61 }
0x1fd5   :  { %2971 = vtanh.f32 %v1962_v49  ;;  %v2643_v53 = vmul.f32 -1.442695, %v1962_v49 }
0x1fd7   :  { %2973 = vpow2.f32 %v2643_v53  ;;  %v2289_v53 = vrot.slane %v3471_v62, 4 }
0x1fdf   :  { %v2972_v52 = vpop.eup %2971 }
0x1fe0   :  { %1972 = vrot.lane.b32.xlu0 %v2972_v52, %s3109_s2 }
0x1fe1   :  { %v2974_v54 = vpop.eup %2973 }
0x1fe2   :  { %v1966_v57 = vadd.f32 1.0, %v2974_v54 }
0x1fe4   :  { %2975 = vrcp.f32 %v1966_v57 }
0x1fee   :  { %v2976_v29 = vpop.eup %2975 }
0x1fef   :  { %v1970_v60 = vmul.f32 %v2976_v29, %v1866_v35 }
0x2052   :  { %v1973_v58 = vpop.permute.xlu0 %1972 }
0x2053   :  { %v1975_v59 = vmul.f32 %v2976_v29, %v1973_v58 }
0x2055   :  { %1977 = vrot.lane.b32.xlu1 %v1975_v59, %s3114_s3 }
0x20c7   :  { %v1978_v63 = vpop.permute.xlu1 %1977 }
0x20c8   :  { %v1980_v1 = vadd.f32 %v1978_v63, %v1970_v60 }
0x20ca   :  { %2977 = vtanh.f32 %v1980_v1 }
0x20d4   :  { %v2978_v2 = vpop.eup %2977 }
0x20d5   :  { %1983 = vrot.lane.b32.xlu0 %v2978_v2, %s3109_s2 }
0x2147   :  { %v1984_v51 = vpop.permute.xlu0 %1983 }
0x2148   :  { %v1986_v3 = vmul.f32 %v2976_v29, %v1984_v51 }
0x214a   :  { %1988 = vrot.lane.b32.xlu1 %v1986_v3, %s3114_s3 }
0x21bc   :  { %v1989_v55 = vpop.permute.xlu1 %1988 }
0x21bd   :  { %2644 = vmatmul.mubr.msk.f32.vlgmr.msra.gmra.mrb[22].mxu0 %vm127_vm0, %v1989_v55 }
0x21be   :  { %2826 = vmatpush1.bf16.msra.mxu0 %v3422_v34  ;;  %2280 = vmatprep.mubr.f32.mxu0 %v3113_v0 }
0x21bf   :  { %2828 = vmatprep.subr.bf16.mxu0 %v3426_v37 }
0x21c2   :  { %2830 = vmatpush1.bf16.msra.mxu0 %v3428_v40 }
0x2290   :  { %v2058_v4 = vpop.f32.mrb[22].mxu0 }
0x2291   :  { %v2060_v5 = vpop.f32.mrb[23].mxu0  ;;  %v2063_v42 = vadd.f32 %v2058_v4, %v3478_v18 }
0x2292   :  { %v2068_v7 = vcombine.high %v2060_v5, %v2060_v5 }
0x2294   :  { %v2070_v8 = vadd.f32 %v2068_v7, %v2065_v6 }
0x2296   :  { %v2072_v10 = vcombine.low %v2070_v8, %v2070_v8 }
0x2298   :  { %v2074_v11 = vsel %vm353_vm1, %v2063_v42, %v2072_v10 }
0x2299   :  { %2979 = vtanh.f32 %v2074_v11  ;;  %v2645_v13 = vmul.f32 -1.442695, %v2074_v11  ;;  %v2401_v11 = vrot.slane %v3469_v9, 4 }
0x229b   :  { %2981 = vpow2.f32 %v2645_v13 }
0x22a3   :  { %v2980_v12 = vpop.eup %2979 }
0x22a4   :  { %2084 = vrot.lane.b32.xlu0 %v2980_v12, %s3109_s2 }
0x22a5   :  { %v2982_v14 = vpop.eup %2981 }
0x22a6   :  { %v2078_v30 = vadd.f32 1.0, %v2982_v14 }
0x22a8   :  { %2983 = vrcp.f32 %v2078_v30 }
0x22b2   :  { %v2984_v33 = vpop.eup %2983 }
0x22b3   :  { %v2082_v31 = vmul.f32 %v2984_v33, %v1980_v1 }
0x2316   :  { %v2085_v16 = vpop.permute.xlu0 %2084 }
0x2317   :  { %v2087_v19 = vmul.f32 %v2984_v33, %v2085_v16 }
0x2319   :  { %2089 = vrot.lane.b32.xlu1 %v2087_v19, %s3114_s3 }
0x238b   :  { %v2090_v25 = vpop.permute.xlu1 %2089 }
0x238c   :  { %v2092_v18 = vadd.f32 %v2090_v25, %v2082_v31 }
0x238e   :  { %2985 = vtanh.f32 %v2092_v18 }
0x2398   :  { %v2986_v20 = vpop.eup %2985 }
0x2399   :  { %2095 = vrot.lane.b32.xlu0 %v2986_v20, %s3109_s2 }
0x240b   :  { %v2096_v21 = vpop.permute.xlu0 %2095 }
0x240c   :  { %v2098_v56 = vmul.f32 %v2984_v33, %v2096_v21 }
0x240e   :  { %2100 = vrot.lane.b32.xlu1 %v2098_v56, %s3114_s3 }
0x2480   :  { %v2101_v24 = vpop.permute.xlu1 %2100 }
0x2481   :  { %2646 = vmatmul.mubr.msk.f32.vlgmr.msra.gmra.mrb[18].mxu1 %vm127_vm0, %v2101_v24  ;;  %v2435_v24 = vld [vmem:[%s3613_s7] sm:$0xff] }
0x2482   :  { %2834 = vmatpush1.bf16.msra.mxu1 %v3422_v34  ;;  %2392 = vmatprep.mubr.f32.mxu1 %v3113_v0 }
0x2483   :  { %2836 = vmatprep.subr.bf16.mxu1 %v3426_v37 }
0x2486   :  { %2838 = vmatpush1.bf16.msra.mxu1 %v3428_v40 }
0x2554   :  { %v2170_v26 = vpop.f32.mrb[18].mxu1 }
0x2555   :  { %v2172_v27 = vpop.f32.mrb[19].mxu1  ;;  %v2175_v35 = vadd.f32 %v2170_v26, %v3480_v22  ;;  %v2436_v26 = vld [vmem:[%s3613_s7 + $0x8] sm:$0xff] }
0x2556   :  { %v2180_v32 = vcombine.high %v2172_v27, %v2172_v27  ;;  %v2439_v27 = vld [vmem:[%s3613_s7 + $0x20] sm:$0xff] }
0x2558   :  { %v2182_v17 = vadd.f32 %v2180_v32, %v2177_v28  ;;  %v3115_v28 = vmov 0.0|0.0   ;;  %v2846_v32 = vpack.c.bf16 %v2436_v26, %v2435_v24 }
0x2559   :  { %2845 = vmatprep.subr.bf16.mxu1 %v3115_v28  ;;  %2839 = vmatprep.subr.bf16.mxu0 %v3115_v28 }
0x255a   :  { %v2184_v36 = vcombine.low %v2182_v17, %v2182_v17  ;;  %v2440_v17 = vld [vmem:[%s3613_s7 + $0x28] sm:$0xff] }
0x255c   :  { %v2186_v38 = vsel %vm353_vm1, %v2175_v35, %v2184_v36  ;;  %v2437_v35 = vld [vmem:[%s3613_s7 + $0x10] sm:$0xff]  ;;  %v2438_v36 = vld [vmem:[%s3613_s7 + $0x18] sm:$0xff] }
0x255d   :  { %2987 = vtanh.f32 %v2186_v38  ;;  %v2647_v34 = vmul.f32 -1.442695, %v2186_v38  ;;  %v2840_v38 = vpack.c.bf16 %v2440_v17, %v2439_v27 }
0x255f   :  { %2989 = vpow2.f32 %v2647_v34  ;;  %v2442_v34 = vld [vmem:[%s3613_s7 + $0x38] sm:$0xff] }
0x2567   :  { %v2988_v39 = vpop.eup %2987 }
0x2568   :  { %2196 = vrot.lane.b32.xlu0 %v2988_v39, %s3109_s2  ;;  %v2441_v39 = vld [vmem:[%s3613_s7 + $0x30] sm:$0xff] }
0x2569   :  { %v2990_v37 = vpop.eup %2989 }
0x256a   :  { %v2190_v41 = vadd.f32 1.0, %v2990_v37  ;;  %v2849_v37 = vpack.c.bf16 %v2438_v36, %v2437_v35 }
0x256c   :  { %2991 = vrcp.f32 %v2190_v41  ;;  %v2843_v41 = vpack.c.bf16 %v2442_v34, %v2441_v39 }
0x2576   :  { %v2992_v40 = vpop.eup %2991 }
0x2577   :  { %v2194_v15 = vmul.f32 %v2992_v40, %v2092_v18 }
0x25da   :  { %v2197_v43 = vpop.permute.xlu0 %2196 }
0x25db   :  { %v2199_v45 = vmul.f32 %v2992_v40, %v2197_v43 }
0x25dd   :  { %2201 = vrot.lane.b32.xlu1 %v2199_v45, %s3114_s3 }
0x264f   :  { %v2202_v46 = vpop.permute.xlu1 %2201 }
0x2650   :  { %v2204_v22 = vadd.f32 %v2202_v46, %v2194_v15 }
0x2652   :  { %2993 = vtanh.f32 %v2204_v22 }
0x265c   :  { %v2994_v47 = vpop.eup %2993 }
0x265d   :  { %2207 = vrot.lane.b32.xlu0 %v2994_v47, %s3109_s2 }
0x26cf   :  { %v2208_v44 = vpop.permute.xlu0 %2207 }
0x26d0   :  { %v2210_v48 = vmul.f32 %v2992_v40, %v2208_v44 }
0x26d2   :  { %2212 = vrot.lane.b32.xlu1 %v2210_v48, %s3114_s3  ;;  %v2654_v48 = vld [vmem:[%s3614_s8] ss:$0 sm:$0xff] }
0x2744   :  { %v2213_v61 = vpop.permute.xlu1 %2212 }
0x2745   :  { %2648 = vmatmul.mubr.msk.f32.vlgmr.msra.gmra.mrb[24].mxu0 %vm127_vm0, %v2213_v61 }
0x2746   :  { %2673 = vmatprep.mubr.msk.f32.mxu0 %vm3116_vm4, %v3113_v0  ;;  %2841 = vmatpush3.bf16.msra.mxu0 %v2840_v38 }
0x2747   :  { %2842 = vmatprep.subr.bf16.mxu0 %v3115_v28 }
0x274a   :  { %2844 = vmatpush3.bf16.msra.mxu0 %v2843_v41 }
0x2818   :  { %v2282_v49 = vpop.f32.mrb[24].mxu0 }
0x2819   :  { %v2284_v52 = vpop.f32.mrb[25].mxu0  ;;  %v2287_v29 = vadd.f32 %v2282_v49, %v3482_v50 }
0x281a   :  { %v2292_v54 = vcombine.high %v2284_v52, %v2284_v52 }
0x281c   :  { %v2294_v57 = vadd.f32 %v2292_v54, %v2289_v53 }
0x281e   :  { %v2296_v58 = vcombine.low %v2294_v57, %v2294_v57 }
0x2820   :  { %v2298_v59 = vsel %vm353_vm1, %v2287_v29, %v2296_v58 }
0x2821   :  { %2995 = vtanh.f32 %v2298_v59  ;;  %v2649_v63 = vmul.f32 -1.442695, %v2298_v59 }
0x2823   :  { %2997 = vpow2.f32 %v2649_v63 }
0x282b   :  { %v2996_v60 = vpop.eup %2995 }
0x282c   :  { %2308 = vrot.lane.b32.xlu0 %v2996_v60, %s3109_s2 }
0x282d   :  { %v2998_v1 = vpop.eup %2997 }
0x282e   :  { %v2302_v2 = vadd.f32 1.0, %v2998_v1 }
0x2830   :  { %2999 = vrcp.f32 %v2302_v2 }
0x283a   :  { %v3000_v51 = vpop.eup %2999 }
0x283b   :  { %v2306_v62 = vmul.f32 %v3000_v51, %v2204_v22 }
0x289e   :  { %v2309_v3 = vpop.permute.xlu0 %2308 }
0x289f   :  { %v2311_v55 = vmul.f32 %v3000_v51, %v2309_v3 }
0x28a1   :  { %2313 = vrot.lane.b32.xlu1 %v2311_v55, %s3114_s3 }
0x2913   :  { %v2314_v4 = vpop.permute.xlu1 %2313 }
0x2914   :  { %v2316_v50 = vadd.f32 %v2314_v4, %v2306_v62 }
0x2916   :  { %3001 = vtanh.f32 %v2316_v50 }
0x2920   :  { %v3002_v5 = vpop.eup %3001 }
0x2921   :  { %2319 = vrot.lane.b32.xlu0 %v3002_v5, %s3109_s2 }
0x2993   :  { %v2320_v6 = vpop.permute.xlu0 %2319 }
0x2994   :  { %v2322_v7 = vmul.f32 %v3000_v51, %v2320_v6 }
0x2996   :  { %2324 = vrot.lane.b32.xlu1 %v2322_v7, %s3114_s3 }
0x2a08   :  { %v2325_v8 = vpop.permute.xlu1 %2324 }
0x2a09   :  { %2650 = vmatmul.mubr.msk.f32.vlgmr.msra.gmra.mrb[20].mxu1 %vm127_vm0, %v2325_v8 }
0x2a0a   :  { %2684 = vmatprep.mubr.msk.f32.mxu1 %vm3116_vm4, %v3113_v0  ;;  %2847 = vmatpush3.bf16.msra.mxu1 %v2846_v32 }
0x2a0b   :  { %2848 = vmatprep.subr.bf16.mxu1 %v3115_v28 }
0x2a0e   :  { %2850 = vmatpush3.bf16.msra.mxu1 %v2849_v37 }
0x2adc   :  { %v2394_v42 = vpop.f32.mrb[20].mxu1 }
0x2add   :  { %v2396_v10 = vpop.f32.mrb[21].mxu1  ;;  %v2399_v14 = vadd.f32 %v2394_v42, %v3484_v23 }
0x2ade   :  { %v2404_v12 = vcombine.high %v2396_v10, %v2396_v10 }
0x2ae0   :  { %v2406_v13 = vadd.f32 %v2404_v12, %v2401_v11 }
0x2ae2   :  { %v2408_v30 = vcombine.low %v2406_v13, %v2406_v13 }
0x2ae4   :  { %v2410_v33 = vsel %vm353_vm1, %v2399_v14, %v2408_v30 }
0x2ae5   :  { %3003 = vtanh.f32 %v2410_v33  ;;  %v2651_v19 = vmul.f32 -1.442695, %v2410_v33 }
0x2ae7   :  { %3005 = vpow2.f32 %v2651_v19 }
0x2aef   :  { %v3004_v16 = vpop.eup %3003 }
0x2af0   :  { %2420 = vrot.lane.b32.xlu0 %v3004_v16, %s3109_s2 }
0x2af1   :  { %v3006_v31 = vpop.eup %3005 }
0x2af2   :  { %v2414_v25 = vadd.f32 1.0, %v3006_v31 }
0x2af4   :  { %3007 = vrcp.f32 %v2414_v25 }
0x2afe   :  { %v3008_v18 = vpop.eup %3007 }
0x2aff   :  { %v2418_v9 = vmul.f32 %v3008_v18, %v2316_v50 }
0x2b62   :  { %v2421_v20 = vpop.permute.xlu0 %2420 }
0x2b63   :  { %v2423_v21 = vmul.f32 %v3008_v18, %v2421_v20 }
0x2b65   :  { %2425 = vrot.lane.b32.xlu1 %v2423_v21, %s3114_s3 }
0x2bd7   :  { %v2426_v56 = vpop.permute.xlu1 %2425 }
0x2bd8   :  { %v2428_v23 = vadd.f32 %v2426_v56, %v2418_v9 }
0x2bda   :  { %3009 = vtanh.f32 %v2428_v23 }
0x2be4   :  { %v3010_v40 = vpop.eup %3009 }
0x2be5   :  { %2431 = vrot.lane.b32.xlu0 %v3010_v40, %s3109_s2 }
0x2c57   :  { %v2432_v43 = vpop.permute.xlu0 %2431 }
0x2c58   :  { %v2434_v45 = vmul.f32 %v3008_v18, %v2432_v43 }
0x2c5a   :  { %v2444_v15 = vrot.slane %v2434_v45, 4  ;;  %2519 = vrot.lane.b32.xlu0 %v2434_v45, %s3114_s3 }
0x2c5c   :  { %2445 = vrot.lane.b32.xlu1 %v2444_v15, %s3114_s3 }
0x2ccc   :  { %v2520_v46 = vpop.permute.xlu0 %2519 }
0x2ccd   :  { %2685 = vmatmul.mubr.msk.f32.vlgmr.msra.gmra.mrb[22].mxu1 %vm127_vm0, %v2520_v46 }
0x2cce   :  { %v2446_v0 = vpop.permute.xlu1 %2445 }
0x2ccf   :  { %2674 = vmatmul.mubr.msk.f32.vlgmr.msra.gmra.mrb[26].mxu0 %vm127_vm0, %v2446_v0 }
0x2da0   :  { %v2589_v22 = vpop.f32.mrb[22].mxu1 }
0x2da1   :  { %v2686_v47 = vpop.f32.mrb[23].mxu1 }
0x2da2   :  { %v2515_v44 = vpop.f32.mrb[26].mxu0 }
0x2da3   :  { %v2590_v61 = vadd.f32 %v2589_v22, %v2515_v44  ;;  %v2675_v49 = vpop.f32.mrb[27].mxu0 }
0x2da5   :  { %v2600_v52 = vadd.f32 %v2654_v48, %v2590_v61 }
0x2da7   :  { %2602 = vst.msk [vmem:[%s3615_s9] sm:$0xf] %vm2601_vm5, %v2600_v52 }
0x2da8   :  { %2607 = vsyncpa [#allocation6], 1 }
0x2da9   :  { %2608 = vsyncpa [#allocation8], 1 }
0x2daa   :  { %2609 = vsyncpa [#allocation11], 1 }

</bundles_post_ra>
